<compile_context>
chip_gen: v7x
topology: tpu7x:2x2x1
jax: 0.10.0
libtpu: 0.0.40
codegen_flags: <defaults>
</compile_context>

<pallas_src>
import jax
import jax.numpy as jnp
from jax import lax
from jax.experimental import pallas as pl
from jax.experimental.pallas import tpu as pltpu

EPS = 1e-5                   # PyTorch InstanceNorm2d default
MXU_DTYPE = jnp.bfloat16     # MXU operand dtype (accumulation stays f32)


def _down_kernel(xp_ref,                       # (1, 4, Hp, Wp, Cin)  f32
                 w1_ref, g1_ref, be1_ref, a1_ref,
                 w2_ref, g2_ref, be2_ref, a2_ref,
                 o_ref,                        # (1, Hp, Wp, Cout)    f32
                 pad1_ref, col1_ref, pad2_ref, col2_ref):
    _, _, Hp, Wp, Cin = xp_ref.shape
    Cout = o_ref.shape[3]
    HW = Hp * Wp

    # ---- MaxPool2d(2,2): wrapper pre-split each 2x2 window onto axis 1 ----
    pooled = jnp.max(xp_ref[...], axis=(0, 1))             # (Hp, Wp, Cin) f32

    def conv_in_prelu(src, pad_ref, col_ref, w_ref, g_ref, be_ref, a_ref):
        c_in = pad_ref.shape[2]
        # zero only the 1-pixel halo; the interior is rewritten every grid step
        zrow = jnp.zeros((1, Wp + 2, c_in), jnp.float32)
        zcol = jnp.zeros((Hp + 2, 1, c_in), jnp.float32)
        pad_ref[0:1, :, :] = zrow
        pad_ref[Hp + 1:Hp + 2, :, :] = zrow
        pad_ref[:, 0:1, :] = zcol
        pad_ref[:, Wp + 1:Wp + 2, :] = zcol
        pad_ref[1:Hp + 1, 1:Wp + 1, :] = src                # (Hp, Wp, c_in)

        # im2col: 9 shifted taps packed along the lane axis (bf16) -> one MXU matmul
        for k in range(9):
            dy, dx = k // 3, k % 3
            col_ref[:, :, k * c_in:(k + 1) * c_in] = (
                pad_ref[dy:dy + Hp, dx:dx + Wp, :].astype(col_ref.dtype))
        cols = col_ref[...].reshape(HW, 9 * c_in)           # (HW, 9*c_in) bf16
        h = jnp.dot(cols, w_ref[...],
                    preferred_element_type=jnp.float32)     # (HW, c_out)  f32
        # conv bias omitted: per-channel constants cancel in the InstanceNorm below.

        # InstanceNorm2d(affine=True): one-pass stats over spatial positions
        inv_n = 1.0 / HW
        s1 = jnp.sum(h, axis=0, keepdims=True)              # (1, c_out)
        s2 = jnp.sum(h * h, axis=0, keepdims=True)
        mean = s1 * inv_n
        var = s2 * inv_n - mean * mean
        scale = g_ref[...] * lax.rsqrt(var + EPS)
        shift = be_ref[...] - mean * scale
        y = h * scale + shift
        # PReLU(num_parameters=c_out)
        return jnp.where(y > 0, y, a_ref[...] * y)          # (HW, c_out) f32

    h1 = conv_in_prelu(pooled, pad1_ref, col1_ref, w1_ref, g1_ref, be1_ref, a1_ref)
    h2 = conv_in_prelu(h1.reshape(Hp, Wp, Cout), pad2_ref, col2_ref,
                       w2_ref, g2_ref, be2_ref, a2_ref)
    o_ref[...] = h2.reshape(1, Hp, Wp, Cout).astype(o_ref.dtype)


def down_forward(x_nchw, params):
    """x_nchw: (N, Cin, H, W) float32 -> (N, Cout, H//2, W//2) float32."""
    N, Cin, H, W = x_nchw.shape
    Cout = params["w1"].shape[3]
    Hp, Wp = H // 2, W // 2

    # NCHW -> NHWC, floor-crop odd spatial dims (MaxPool2d floor semantics), and put
    # each 2x2 pooling window on its own leading axis so the kernel needs no strided
    # loads (layout plumbing only): (N, 4, Hp, Wp, Cin)
    x = jnp.transpose(x_nchw[:, :, :2 * Hp, :2 * Wp], (0, 2, 3, 1))
    xp = x.reshape(N, Hp, 2, Wp, 2, Cin).transpose(0, 2, 4, 1, 3, 5)
    xp = xp.reshape(N, 4, Hp, Wp, Cin)

    # HWIO conv weights -> im2col layout (9*Cin, Cout), cast to bf16 MXU operands
    w1 = params["w1"].reshape(9 * Cin, Cout).astype(MXU_DTYPE)
    w2 = params["w2"].reshape(9 * Cout, Cout).astype(MXU_DTYPE)
    g1, be1, a1 = params["g1"], params["be1"], params["a1"]
    g2, be2, a2 = params["g2"], params["be2"], params["a2"]
    # conv biases intentionally not passed: InstanceNorm removes them exactly.

    def full_spec(shape):
        zeros = (0,) * len(shape)
        return pl.BlockSpec(shape, lambda n, _z=zeros: _z)

    in_specs = [
        pl.BlockSpec((1, 4, Hp, Wp, Cin), lambda n: (n, 0, 0, 0, 0)),
        full_spec((9 * Cin, Cout)), full_spec((1, Cout)), full_spec((1, Cout)),
        full_spec((1, Cout)),
        full_spec((9 * Cout, Cout)), full_spec((1, Cout)), full_spec((1, Cout)),
        full_spec((1, Cout)),
    ]

    # Size the scoped-VMEM limit from the actual footprint (with pipeline headroom);
    # the default scoped limit is well below physical VMEM.
    block_bytes = (
        2 * (4 * Hp * Wp * Cin) * 4                 # input block (double-buffered)
        + 2 * (Hp * Wp * Cout) * 4                  # output block
        + 2 * (9 * Cin + 9 * Cout) * Cout * 2       # bf16 weights
        + 2 * 6 * Cout * 4                          # per-channel affine/PReLU params
        + (Hp + 2) * (Wp + 2) * (Cin + Cout) * 4    # pad scratches (f32)
        + Hp * Wp * 9 * (Cin + Cout) * 2            # im2col scratches (bf16)
    )
    vmem_limit = int(min(64 * 2**20, max(16 * 2**20, 8 * block_bytes)))

    out = pl.pallas_call(
        _down_kernel,
        out_shape=jax.ShapeDtypeStruct((N, Hp, Wp, Cout), jnp.float32),
        grid=(N,),
        in_specs=in_specs,
        out_specs=pl.BlockSpec((1, Hp, Wp, Cout), lambda n: (n, 0, 0, 0)),
        scratch_shapes=[
            pltpu.VMEM((Hp + 2, Wp + 2, Cin), jnp.float32),   # pad1 (halo-zeroed)
            pltpu.VMEM((Hp, Wp, 9 * Cin), MXU_DTYPE),         # col1 (im2col, bf16)
            pltpu.VMEM((Hp + 2, Wp + 2, Cout), jnp.float32),  # pad2
            pltpu.VMEM((Hp, Wp, 9 * Cout), MXU_DTYPE),        # col2
        ],
        compiler_params=pltpu.CompilerParams(
            dimension_semantics=("parallel",),
            vmem_limit_bytes=vmem_limit),
    )(xp, w1, g1, be1, a1, w2, g2, be2, a2)

    return jnp.transpose(out, (0, 3, 1, 2))  # NHWC -> NCHW


def ref_forward(x_nchw, params, mxu_round=False):
    """Pure-JAX reference (PyTorch Down, DRC DoubleConv).  With mxu_round=True the
    conv operands are rounded to bf16 first (accumulation stays f32), matching the
    kernel's MXU operand dtype so the comparison tolerance can be tight."""
    x = jnp.transpose(x_nchw, (0, 2, 3, 1))
    _, H, W, _ = x.shape
    x = x[:, :2 * (H // 2), :2 * (W // 2), :]
    x = lax.reduce_window(x, -jnp.inf, lax.max, (1, 2, 2, 1), (1, 2, 2, 1), "VALID")

    def rnd(t):
        return t.astype(jnp.bfloat16).astype(jnp.float32) if mxu_round else t

    def block(h, w, b, g, be, a):
        y = lax.conv_general_dilated(
            rnd(h), rnd(w), (1, 1), "SAME",
            dimension_numbers=("NHWC", "HWIO", "NHWC"),
            precision=lax.Precision.HIGHEST,
            preferred_element_type=jnp.float32)
        y = y + b.reshape(1, 1, 1, -1)
        mean = jnp.mean(y, axis=(1, 2), keepdims=True)
        var = jnp.mean((y - mean) ** 2, axis=(1, 2), keepdims=True)
        y = (y - mean) / jnp.sqrt(var + EPS)
        y = y * g.reshape(1, 1, 1, -1) + be.reshape(1, 1, 1, -1)
        return jnp.where(y > 0, y, a.reshape(1, 1, 1, -1) * y)

    h = block(x, params["w1"], params["b1"], params["g1"], params["be1"], params["a1"])
    h = block(h, params["w2"], params["b2"], params["g2"], params["be2"], params["a2"])
    return jnp.transpose(h, (0, 3, 1, 2))


if __name__ == "__main__":
    N, Cin, Cout, H, W = 2, 4, 8, 16, 16
    keys = jax.random.split(jax.random.PRNGKey(0), 9)

    params = dict(
        w1=0.1 * jax.random.normal(keys[0], (3, 3, Cin, Cout), jnp.float32),  # HWIO
        b1=0.05 * jax.random.normal(keys[1], (1, Cout), jnp.float32),
        g1=1.0 + 0.1 * jax.random.normal(keys[2], (1, Cout), jnp.float32),
        be1=0.1 * jax.random.normal(keys[3], (1, Cout), jnp.float32),
        a1=0.25 * jnp.ones((1, Cout), jnp.float32),            # PReLU default init
        w2=0.1 * jax.random.normal(keys[4], (3, 3, Cout, Cout), jnp.float32),
        b2=0.05 * jax.random.normal(keys[5], (1, Cout), jnp.float32),
        g2=1.0 + 0.1 * jax.random.normal(keys[6], (1, Cout), jnp.float32),
        be2=0.1 * jax.random.normal(keys[7], (1, Cout), jnp.float32),
        a2=0.25 * jnp.ones((1, Cout), jnp.float32),
    )
    x = jax.random.normal(keys[8], (N, Cin, H, W), jnp.float32)

    out = jax.block_until_ready(down_forward(x, params))
    assert out.shape == (N, Cout, H // 2, W // 2), out.shape

    # Tight check against a reference with matched bf16 MXU-operand rounding.
    ref_m = ref_forward(x, params, mxu_round=True)
    err_m = float(jnp.max(jnp.abs(out - ref_m)))
    assert err_m < 1e-2, f"mismatch vs matched-precision reference: {err_m}"

    # Coarse sanity check against the pure-f32 PyTorch-semantics reference
    # (difference is only the bf16 operand rounding on the MXU).
    ref_f = ref_forward(x, params, mxu_round=False)
    err_f = float(jnp.max(jnp.abs(out - ref_f)))
    assert err_f < 0.15, f"mismatch vs f32 reference: {err_f}"

    print("KERNEL_OK")
</pallas_src>

<mosaic_0001>
module attributes {stable_mosaic.version = 11 : i64} {
  func.func @_down_kernel(%arg0: i32, %arg1: memref<1x4x8x8x4xf32, #tpu.memory_space<vmem>>, %arg2: memref<36x8xbf16, #tpu.memory_space<vmem>>, %arg3: memref<1x8xf32, #tpu.memory_space<vmem>>, %arg4: memref<1x8xf32, #tpu.memory_space<vmem>>, %arg5: memref<1x8xf32, #tpu.memory_space<vmem>>, %arg6: memref<72x8xbf16, #tpu.memory_space<vmem>>, %arg7: memref<1x8xf32, #tpu.memory_space<vmem>>, %arg8: memref<1x8xf32, #tpu.memory_space<vmem>>, %arg9: memref<1x8xf32, #tpu.memory_space<vmem>>, %arg10: memref<1x8x8x8xf32, #tpu.memory_space<vmem>>, %arg11: memref<10x10x4xf32, #tpu.memory_space<vmem>>, %arg12: memref<8x8x36xbf16, #tpu.memory_space<vmem>>, %arg13: memref<10x10x8xf32, #tpu.memory_space<vmem>>, %arg14: memref<8x8x72xbf16, #tpu.memory_space<vmem>>) attributes {dimension_semantics = [#tpu.dimension_semantics<parallel>], iteration_bounds = array<i64: 2>, scalar_prefetch = 0 : i64, scratch_operands = 4 : i64, tpu.core_type = #tpu.core_type<tc>, window_params = [{transform_indices = @transform_0, window_bounds = array<i64: 1, 4, 8, 8, 4>}, {pipeline_mode = #tpu.pipeline_mode<synchronous>, transform_indices = @transform_1, window_bounds = array<i64: 36, 8>}, {pipeline_mode = #tpu.pipeline_mode<synchronous>, transform_indices = @transform_2, window_bounds = array<i64: 1, 8>}, {pipeline_mode = #tpu.pipeline_mode<synchronous>, transform_indices = @transform_3, window_bounds = array<i64: 1, 8>}, {pipeline_mode = #tpu.pipeline_mode<synchronous>, transform_indices = @transform_4, window_bounds = array<i64: 1, 8>}, {pipeline_mode = #tpu.pipeline_mode<synchronous>, transform_indices = @transform_5, window_bounds = array<i64: 72, 8>}, {pipeline_mode = #tpu.pipeline_mode<synchronous>, transform_indices = @transform_6, window_bounds = array<i64: 1, 8>}, {pipeline_mode = #tpu.pipeline_mode<synchronous>, transform_indices = @transform_7, window_bounds = array<i64: 1, 8>}, {pipeline_mode = #tpu.pipeline_mode<synchronous>, transform_indices = @transform_8, window_bounds = array<i64: 1, 8>}, {transform_indices = @transform_9, window_bounds = array<i64: 1, 8, 8, 8>}]} {
    %c0 = arith.constant 0 : index
    %c0_0 = arith.constant 0 : index
    %c0_1 = arith.constant 0 : index
    %c0_2 = arith.constant 0 : index
    %c0_3 = arith.constant 0 : index
    %0 = vector.load %arg1[%c0, %c0_0, %c0_1, %c0_2, %c0_3] : memref<1x4x8x8x4xf32, #tpu.memory_space<vmem>>, vector<1x4x8x8x4xf32>
    %cst = arith.constant dense<0xFF800000> : vector<8x8x4xf32>
    %1 = vector.multi_reduction <maximumf>, %0, %cst [0, 1] : vector<1x4x8x8x4xf32> to vector<8x8x4xf32>
    %cst_4 = arith.constant 0.000000e+00 : f32
    %2 = vector.broadcast %cst_4 : f32 to vector<1x10x4xf32>
    %cst_5 = arith.constant 0.000000e+00 : f32
    %3 = vector.broadcast %cst_5 : f32 to vector<10x1x4xf32>
    %c0_6 = arith.constant 0 : index
    %c0_7 = arith.constant 0 : index
    %c0_8 = arith.constant 0 : index
    %4 = vector.load %arg11[%c0_6, %c0_7, %c0_8] : memref<10x10x4xf32, #tpu.memory_space<vmem>>, vector<1x10x4xf32>
    tpu.vector_store %arg11[%c0_6, %c0_7, %c0_8], %2 {strides = array<i32>} : memref<10x10x4xf32, #tpu.memory_space<vmem>>, vector<1x10x4xf32>,
    %c9 = arith.constant 9 : index
    %c0_9 = arith.constant 0 : index
    %c0_10 = arith.constant 0 : index
    %5 = vector.load %arg11[%c9, %c0_9, %c0_10] : memref<10x10x4xf32, #tpu.memory_space<vmem>>, vector<1x10x4xf32>
    tpu.vector_store %arg11[%c9, %c0_9, %c0_10], %2 {strides = array<i32>} : memref<10x10x4xf32, #tpu.memory_space<vmem>>, vector<1x10x4xf32>,
    %c0_11 = arith.constant 0 : index
    %c0_12 = arith.constant 0 : index
    %c0_13 = arith.constant 0 : index
    %6 = vector.load %arg11[%c0_11, %c0_12, %c0_13] : memref<10x10x4xf32, #tpu.memory_space<vmem>>, vector<10x1x4xf32>
    tpu.vector_store %arg11[%c0_11, %c0_12, %c0_13], %3 {strides = array<i32>} : memref<10x10x4xf32, #tpu.memory_space<vmem>>, vector<10x1x4xf32>,
    %c0_14 = arith.constant 0 : index
    %c9_15 = arith.constant 9 : index
    %c0_16 = arith.constant 0 : index
    %7 = vector.load %arg11[%c0_14, %c9_15, %c0_16] : memref<10x10x4xf32, #tpu.memory_space<vmem>>, vector<10x1x4xf32>
    tpu.vector_store %arg11[%c0_14, %c9_15, %c0_16], %3 {strides = array<i32>} : memref<10x10x4xf32, #tpu.memory_space<vmem>>, vector<10x1x4xf32>,
    %c1 = arith.constant 1 : index
    %c1_17 = arith.constant 1 : index
    %c0_18 = arith.constant 0 : index
    %8 = vector.load %arg11[%c1, %c1_17, %c0_18] : memref<10x10x4xf32, #tpu.memory_space<vmem>>, vector<8x8x4xf32>
    tpu.vector_store %arg11[%c1, %c1_17, %c0_18], %1 {strides = array<i32>} : memref<10x10x4xf32, #tpu.memory_space<vmem>>, vector<8x8x4xf32>,
    %c0_19 = arith.constant 0 : index
    %c0_20 = arith.constant 0 : index
    %c0_21 = arith.constant 0 : index
    %9 = vector.load %arg11[%c0_19, %c0_20, %c0_21] : memref<10x10x4xf32, #tpu.memory_space<vmem>>, vector<8x8x4xf32>
    %10 = arith.truncf %9 : vector<8x8x4xf32> to vector<8x8x4xbf16>
    %c0_22 = arith.constant 0 : index
    %c0_23 = arith.constant 0 : index
    %c0_24 = arith.constant 0 : index
    %11 = vector.load %arg12[%c0_22, %c0_23, %c0_24] : memref<8x8x36xbf16, #tpu.memory_space<vmem>>, vector<8x8x4xbf16>
    tpu.vector_store %arg12[%c0_22, %c0_23, %c0_24], %10 {strides = array<i32>} : memref<8x8x36xbf16, #tpu.memory_space<vmem>>, vector<8x8x4xbf16>,
    %c0_25 = arith.constant 0 : index
    %c1_26 = arith.constant 1 : index
    %c0_27 = arith.constant 0 : index
    %12 = vector.load %arg11[%c0_25, %c1_26, %c0_27] : memref<10x10x4xf32, #tpu.memory_space<vmem>>, vector<8x8x4xf32>
    %13 = arith.truncf %12 : vector<8x8x4xf32> to vector<8x8x4xbf16>
    %c0_28 = arith.constant 0 : index
    %c0_29 = arith.constant 0 : index
    %c4 = arith.constant 4 : index
    %14 = vector.load %arg12[%c0_28, %c0_29, %c4] : memref<8x8x36xbf16, #tpu.memory_space<vmem>>, vector<8x8x4xbf16>
    tpu.vector_store %arg12[%c0_28, %c0_29, %c4], %13 {strides = array<i32>} : memref<8x8x36xbf16, #tpu.memory_space<vmem>>, vector<8x8x4xbf16>,
    %c0_30 = arith.constant 0 : index
    %c2 = arith.constant 2 : index
    %c0_31 = arith.constant 0 : index
    %15 = vector.load %arg11[%c0_30, %c2, %c0_31] : memref<10x10x4xf32, #tpu.memory_space<vmem>>, vector<8x8x4xf32>
    %16 = arith.truncf %15 : vector<8x8x4xf32> to vector<8x8x4xbf16>
    %c0_32 = arith.constant 0 : index
    %c0_33 = arith.constant 0 : index
    %c8 = arith.constant 8 : index
    %17 = vector.load %arg12[%c0_32, %c0_33, %c8] : memref<8x8x36xbf16, #tpu.memory_space<vmem>>, vector<8x8x4xbf16>
    tpu.vector_store %arg12[%c0_32, %c0_33, %c8], %16 {strides = array<i32>} : memref<8x8x36xbf16, #tpu.memory_space<vmem>>, vector<8x8x4xbf16>,
    %c1_34 = arith.constant 1 : index
    %c0_35 = arith.constant 0 : index
    %c0_36 = arith.constant 0 : index
    %18 = vector.load %arg11[%c1_34, %c0_35, %c0_36] : memref<10x10x4xf32, #tpu.memory_space<vmem>>, vector<8x8x4xf32>
    %19 = arith.truncf %18 : vector<8x8x4xf32> to vector<8x8x4xbf16>
    %c0_37 = arith.constant 0 : index
    %c0_38 = arith.constant 0 : index
    %c12 = arith.constant 12 : index
    %20 = vector.load %arg12[%c0_37, %c0_38, %c12] : memref<8x8x36xbf16, #tpu.memory_space<vmem>>, vector<8x8x4xbf16>
    tpu.vector_store %arg12[%c0_37, %c0_38, %c12], %19 {strides = array<i32>} : memref<8x8x36xbf16, #tpu.memory_space<vmem>>, vector<8x8x4xbf16>,
    %c1_39 = arith.constant 1 : index
    %c1_40 = arith.constant 1 : index
    %c0_41 = arith.constant 0 : index
    %21 = vector.load %arg11[%c1_39, %c1_40, %c0_41] : memref<10x10x4xf32, #tpu.memory_space<vmem>>, vector<8x8x4xf32>
    %22 = arith.truncf %21 : vector<8x8x4xf32> to vector<8x8x4xbf16>
    %c0_42 = arith.constant 0 : index
    %c0_43 = arith.constant 0 : index
    %c16 = arith.constant 16 : index
    %23 = vector.load %arg12[%c0_42, %c0_43, %c16] : memref<8x8x36xbf16, #tpu.memory_space<vmem>>, vector<8x8x4xbf16>
    tpu.vector_store %arg12[%c0_42, %c0_43, %c16], %22 {strides = array<i32>} : memref<8x8x36xbf16, #tpu.memory_space<vmem>>, vector<8x8x4xbf16>,
    %c1_44 = arith.constant 1 : index
    %c2_45 = arith.constant 2 : index
    %c0_46 = arith.constant 0 : index
    %24 = vector.load %arg11[%c1_44, %c2_45, %c0_46] : memref<10x10x4xf32, #tpu.memory_space<vmem>>, vector<8x8x4xf32>
    %25 = arith.truncf %24 : vector<8x8x4xf32> to vector<8x8x4xbf16>
    %c0_47 = arith.constant 0 : index
    %c0_48 = arith.constant 0 : index
    %c20 = arith.constant 20 : index
    %26 = vector.load %arg12[%c0_47, %c0_48, %c20] : memref<8x8x36xbf16, #tpu.memory_space<vmem>>, vector<8x8x4xbf16>
    tpu.vector_store %arg12[%c0_47, %c0_48, %c20], %25 {strides = array<i32>} : memref<8x8x36xbf16, #tpu.memory_space<vmem>>, vector<8x8x4xbf16>,
    %c2_49 = arith.constant 2 : index
    %c0_50 = arith.constant 0 : index
    %c0_51 = arith.constant 0 : index
    %27 = vector.load %arg11[%c2_49, %c0_50, %c0_51] : memref<10x10x4xf32, #tpu.memory_space<vmem>>, vector<8x8x4xf32>
    %28 = arith.truncf %27 : vector<8x8x4xf32> to vector<8x8x4xbf16>
    %c0_52 = arith.constant 0 : index
    %c0_53 = arith.constant 0 : index
    %c24 = arith.constant 24 : index
    %29 = vector.load %arg12[%c0_52, %c0_53, %c24] : memref<8x8x36xbf16, #tpu.memory_space<vmem>>, vector<8x8x4xbf16>
    tpu.vector_store %arg12[%c0_52, %c0_53, %c24], %28 {strides = array<i32>} : memref<8x8x36xbf16, #tpu.memory_space<vmem>>, vector<8x8x4xbf16>,
    %c2_54 = arith.constant 2 : index
    %c1_55 = arith.constant 1 : index
    %c0_56 = arith.constant 0 : index
    %30 = vector.load %arg11[%c2_54, %c1_55, %c0_56] : memref<10x10x4xf32, #tpu.memory_space<vmem>>, vector<8x8x4xf32>
    %31 = arith.truncf %30 : vector<8x8x4xf32> to vector<8x8x4xbf16>
    %c0_57 = arith.constant 0 : index
    %c0_58 = arith.constant 0 : index
    %c28 = arith.constant 28 : index
    %32 = vector.load %arg12[%c0_57, %c0_58, %c28] : memref<8x8x36xbf16, #tpu.memory_space<vmem>>, vector<8x8x4xbf16>
    tpu.vector_store %arg12[%c0_57, %c0_58, %c28], %31 {strides = array<i32>} : memref<8x8x36xbf16, #tpu.memory_space<vmem>>, vector<8x8x4xbf16>,
    %c2_59 = arith.constant 2 : index
    %c2_60 = arith.constant 2 : index
    %c0_61 = arith.constant 0 : index
    %33 = vector.load %arg11[%c2_59, %c2_60, %c0_61] : memref<10x10x4xf32, #tpu.memory_space<vmem>>, vector<8x8x4xf32>
    %34 = arith.truncf %33 : vector<8x8x4xf32> to vector<8x8x4xbf16>
    %c0_62 = arith.constant 0 : index
    %c0_63 = arith.constant 0 : index
    %c32 = arith.constant 32 : index
    %35 = vector.load %arg12[%c0_62, %c0_63, %c32] : memref<8x8x36xbf16, #tpu.memory_space<vmem>>, vector<8x8x4xbf16>
    tpu.vector_store %arg12[%c0_62, %c0_63, %c32], %34 {strides = array<i32>} : memref<8x8x36xbf16, #tpu.memory_space<vmem>>, vector<8x8x4xbf16>,
    %c0_64 = arith.constant 0 : index
    %c0_65 = arith.constant 0 : index
    %c0_66 = arith.constant 0 : index
    %36 = vector.load %arg12[%c0_64, %c0_65, %c0_66] : memref<8x8x36xbf16, #tpu.memory_space<vmem>>, vector<8x8x36xbf16>
    %37 = vector.shape_cast %36 : vector<8x8x36xbf16> to vector<64x36xbf16>
    %c0_67 = arith.constant 0 : index
    %c0_68 = arith.constant 0 : index
    %38 = vector.load %arg2[%c0_67, %c0_68] : memref<36x8xbf16, #tpu.memory_space<vmem>>, vector<36x8xbf16>
    %cst_69 = arith.constant dense<0.000000e+00> : vector<64x8xf32>
    %39 = tpu.matmul %37, %38, %cst_69 {dimension_numbers = #tpu.dot_dimension_numbers<[1], [0], [0], [1], [0, 0, 1, 1], [], []>} : vector<64x36xbf16>, vector<36x8xbf16>, vector<64x8xf32> -> vector<64x8xf32>
    %cst_70 = arith.constant dense<0.000000e+00> : vector<8xf32>
    %40 = vector.multi_reduction <add>, %39, %cst_70 [0] : vector<64x8xf32> to vector<8xf32>
    %41 = vector.shape_cast %40 : vector<8xf32> to vector<1x8xf32>
    %42 = arith.mulf %39, %39 : vector<64x8xf32>
    %cst_71 = arith.constant dense<0.000000e+00> : vector<8xf32>
    %43 = vector.multi_reduction <add>, %42, %cst_71 [0] : vector<64x8xf32> to vector<8xf32>
    %44 = vector.shape_cast %43 : vector<8xf32> to vector<1x8xf32>
    %cst_72 = arith.constant 1.562500e-02 : f32
    %45 = vector.broadcast %cst_72 : f32 to vector<1x8xf32>
    %46 = arith.mulf %41, %45 : vector<1x8xf32>
    %cst_73 = arith.constant 1.562500e-02 : f32
    %47 = vector.broadcast %cst_73 : f32 to vector<1x8xf32>
    %48 = arith.mulf %44, %47 : vector<1x8xf32>
    %49 = arith.mulf %46, %46 : vector<1x8xf32>
    %50 = arith.subf %48, %49 : vector<1x8xf32>
    %c0_74 = arith.constant 0 : index
    %c0_75 = arith.constant 0 : index
    %51 = vector.load %arg3[%c0_74, %c0_75] : memref<1x8xf32, #tpu.memory_space<vmem>>, vector<1x8xf32>
    %cst_76 = arith.constant 9.99999974E-6 : f32
    %52 = vector.broadcast %cst_76 : f32 to vector<1x8xf32>
    %53 = arith.addf %50, %52 : vector<1x8xf32>
    %54 = math.rsqrt %53 : vector<1x8xf32>
    %55 = arith.mulf %51, %54 : vector<1x8xf32>
    %c0_77 = arith.constant 0 : index
    %c0_78 = arith.constant 0 : index
    %56 = vector.load %arg4[%c0_77, %c0_78] : memref<1x8xf32, #tpu.memory_space<vmem>>, vector<1x8xf32>
    %57 = arith.mulf %46, %55 : vector<1x8xf32>
    %58 = arith.subf %56, %57 : vector<1x8xf32>
    %59 = vector.broadcast %55 : vector<1x8xf32> to vector<64x8xf32>
    %60 = arith.mulf %39, %59 : vector<64x8xf32>
    %61 = vector.broadcast %58 : vector<1x8xf32> to vector<64x8xf32>
    %62 = arith.addf %60, %61 : vector<64x8xf32>
    %cst_79 = arith.constant 0.000000e+00 : f32
    %63 = vector.broadcast %cst_79 : f32 to vector<64x8xf32>
    %64 = arith.cmpf ogt, %62, %63 : vector<64x8xf32>
    %c0_80 = arith.constant 0 : index
    %c0_81 = arith.constant 0 : index
    %65 = vector.load %arg5[%c0_80, %c0_81] : memref<1x8xf32, #tpu.memory_space<vmem>>, vector<1x8xf32>
    %66 = vector.broadcast %65 : vector<1x8xf32> to vector<64x8xf32>
    %67 = arith.mulf %66, %62 : vector<64x8xf32>
    %68 = arith.select %64, %62, %67 : vector<64x8xi1>, vector<64x8xf32>
    %69 = vector.shape_cast %68 : vector<64x8xf32> to vector<8x8x8xf32>
    %cst_82 = arith.constant 0.000000e+00 : f32
    %70 = vector.broadcast %cst_82 : f32 to vector<1x10x8xf32>
    %cst_83 = arith.constant 0.000000e+00 : f32
    %71 = vector.broadcast %cst_83 : f32 to vector<10x1x8xf32>
    %c0_84 = arith.constant 0 : index
    %c0_85 = arith.constant 0 : index
    %c0_86 = arith.constant 0 : index
    %72 = vector.load %arg13[%c0_84, %c0_85, %c0_86] : memref<10x10x8xf32, #tpu.memory_space<vmem>>, vector<1x10x8xf32>
    tpu.vector_store %arg13[%c0_84, %c0_85, %c0_86], %70 {strides = array<i32>} : memref<10x10x8xf32, #tpu.memory_space<vmem>>, vector<1x10x8xf32>,
    %c9_87 = arith.constant 9 : index
    %c0_88 = arith.constant 0 : index
    %c0_89 = arith.constant 0 : index
    %73 = vector.load %arg13[%c9_87, %c0_88, %c0_89] : memref<10x10x8xf32, #tpu.memory_space<vmem>>, vector<1x10x8xf32>
    tpu.vector_store %arg13[%c9_87, %c0_88, %c0_89], %70 {strides = array<i32>} : memref<10x10x8xf32, #tpu.memory_space<vmem>>, vector<1x10x8xf32>,
    %c0_90 = arith.constant 0 : index
    %c0_91 = arith.constant 0 : index
    %c0_92 = arith.constant 0 : index
    %74 = vector.load %arg13[%c0_90, %c0_91, %c0_92] : memref<10x10x8xf32, #tpu.memory_space<vmem>>, vector<10x1x8xf32>
    tpu.vector_store %arg13[%c0_90, %c0_91, %c0_92], %71 {strides = array<i32>} : memref<10x10x8xf32, #tpu.memory_space<vmem>>, vector<10x1x8xf32>,
    %c0_93 = arith.constant 0 : index
    %c9_94 = arith.constant 9 : index
    %c0_95 = arith.constant 0 : index
    %75 = vector.load %arg13[%c0_93, %c9_94, %c0_95] : memref<10x10x8xf32, #tpu.memory_space<vmem>>, vector<10x1x8xf32>
    tpu.vector_store %arg13[%c0_93, %c9_94, %c0_95], %71 {strides = array<i32>} : memref<10x10x8xf32, #tpu.memory_space<vmem>>, vector<10x1x8xf32>,
    %c1_96 = arith.constant 1 : index
    %c1_97 = arith.constant 1 : index
    %c0_98 = arith.constant 0 : index
    %76 = vector.load %arg13[%c1_96, %c1_97, %c0_98] : memref<10x10x8xf32, #tpu.memory_space<vmem>>, vector<8x8x8xf32>
    tpu.vector_store %arg13[%c1_96, %c1_97, %c0_98], %69 {strides = array<i32>} : memref<10x10x8xf32, #tpu.memory_space<vmem>>, vector<8x8x8xf32>,
    %c0_99 = arith.constant 0 : index
    %c0_100 = arith.constant 0 : index
    %c0_101 = arith.constant 0 : index
    %77 = vector.load %arg13[%c0_99, %c0_100, %c0_101] : memref<10x10x8xf32, #tpu.memory_space<vmem>>, vector<8x8x8xf32>
    %78 = arith.truncf %77 : vector<8x8x8xf32> to vector<8x8x8xbf16>
    %c0_102 = arith.constant 0 : index
    %c0_103 = arith.constant 0 : index
    %c0_104 = arith.constant 0 : index
    %79 = vector.load %arg14[%c0_102, %c0_103, %c0_104] : memref<8x8x72xbf16, #tpu.memory_space<vmem>>, vector<8x8x8xbf16>
    tpu.vector_store %arg14[%c0_102, %c0_103, %c0_104], %78 {strides = array<i32>} : memref<8x8x72xbf16, #tpu.memory_space<vmem>>, vector<8x8x8xbf16>,
    %c0_105 = arith.constant 0 : index
    %c1_106 = arith.constant 1 : index
    %c0_107 = arith.constant 0 : index
    %80 = vector.load %arg13[%c0_105, %c1_106, %c0_107] : memref<10x10x8xf32, #tpu.memory_space<vmem>>, vector<8x8x8xf32>
    %81 = arith.truncf %80 : vector<8x8x8xf32> to vector<8x8x8xbf16>
    %c0_108 = arith.constant 0 : index
    %c0_109 = arith.constant 0 : index
    %c8_110 = arith.constant 8 : index
    %82 = vector.load %arg14[%c0_108, %c0_109, %c8_110] : memref<8x8x72xbf16, #tpu.memory_space<vmem>>, vector<8x8x8xbf16>
    tpu.vector_store %arg14[%c0_108, %c0_109, %c8_110], %81 {strides = array<i32>} : memref<8x8x72xbf16, #tpu.memory_space<vmem>>, vector<8x8x8xbf16>,
    %c0_111 = arith.constant 0 : index
    %c2_112 = arith.constant 2 : index
    %c0_113 = arith.constant 0 : index
    %83 = vector.load %arg13[%c0_111, %c2_112, %c0_113] : memref<10x10x8xf32, #tpu.memory_space<vmem>>, vector<8x8x8xf32>
    %84 = arith.truncf %83 : vector<8x8x8xf32> to vector<8x8x8xbf16>
    %c0_114 = arith.constant 0 : index
    %c0_115 = arith.constant 0 : index
    %c16_116 = arith.constant 16 : index
    %85 = vector.load %arg14[%c0_114, %c0_115, %c16_116] : memref<8x8x72xbf16, #tpu.memory_space<vmem>>, vector<8x8x8xbf16>
    tpu.vector_store %arg14[%c0_114, %c0_115, %c16_116], %84 {strides = array<i32>} : memref<8x8x72xbf16, #tpu.memory_space<vmem>>, vector<8x8x8xbf16>,
    %c1_117 = arith.constant 1 : index
    %c0_118 = arith.constant 0 : index
    %c0_119 = arith.constant 0 : index
    %86 = vector.load %arg13[%c1_117, %c0_118, %c0_119] : memref<10x10x8xf32, #tpu.memory_space<vmem>>, vector<8x8x8xf32>
    %87 = arith.truncf %86 : vector<8x8x8xf32> to vector<8x8x8xbf16>
    %c0_120 = arith.constant 0 : index
    %c0_121 = arith.constant 0 : index
    %c24_122 = arith.constant 24 : index
    %88 = vector.load %arg14[%c0_120, %c0_121, %c24_122] : memref<8x8x72xbf16, #tpu.memory_space<vmem>>, vector<8x8x8xbf16>
    tpu.vector_store %arg14[%c0_120, %c0_121, %c24_122], %87 {strides = array<i32>} : memref<8x8x72xbf16, #tpu.memory_space<vmem>>, vector<8x8x8xbf16>,
    %c1_123 = arith.constant 1 : index
    %c1_124 = arith.constant 1 : index
    %c0_125 = arith.constant 0 : index
    %89 = vector.load %arg13[%c1_123, %c1_124, %c0_125] : memref<10x10x8xf32, #tpu.memory_space<vmem>>, vector<8x8x8xf32>
    %90 = arith.truncf %89 : vector<8x8x8xf32> to vector<8x8x8xbf16>
    %c0_126 = arith.constant 0 : index
    %c0_127 = arith.constant 0 : index
    %c32_128 = arith.constant 32 : index
    %91 = vector.load %arg14[%c0_126, %c0_127, %c32_128] : memref<8x8x72xbf16, #tpu.memory_space<vmem>>, vector<8x8x8xbf16>
    tpu.vector_store %arg14[%c0_126, %c0_127, %c32_128], %90 {strides = array<i32>} : memref<8x8x72xbf16, #tpu.memory_space<vmem>>, vector<8x8x8xbf16>,
    %c1_129 = arith.constant 1 : index
    %c2_130 = arith.constant 2 : index
    %c0_131 = arith.constant 0 : index
    %92 = vector.load %arg13[%c1_129, %c2_130, %c0_131] : memref<10x10x8xf32, #tpu.memory_space<vmem>>, vector<8x8x8xf32>
    %93 = arith.truncf %92 : vector<8x8x8xf32> to vector<8x8x8xbf16>
    %c0_132 = arith.constant 0 : index
    %c0_133 = arith.constant 0 : index
    %c40 = arith.constant 40 : index
    %94 = vector.load %arg14[%c0_132, %c0_133, %c40] : memref<8x8x72xbf16, #tpu.memory_space<vmem>>, vector<8x8x8xbf16>
    tpu.vector_store %arg14[%c0_132, %c0_133, %c40], %93 {strides = array<i32>} : memref<8x8x72xbf16, #tpu.memory_space<vmem>>, vector<8x8x8xbf16>,
    %c2_134 = arith.constant 2 : index
    %c0_135 = arith.constant 0 : index
    %c0_136 = arith.constant 0 : index
    %95 = vector.load %arg13[%c2_134, %c0_135, %c0_136] : memref<10x10x8xf32, #tpu.memory_space<vmem>>, vector<8x8x8xf32>
    %96 = arith.truncf %95 : vector<8x8x8xf32> to vector<8x8x8xbf16>
    %c0_137 = arith.constant 0 : index
    %c0_138 = arith.constant 0 : index
    %c48 = arith.constant 48 : index
    %97 = vector.load %arg14[%c0_137, %c0_138, %c48] : memref<8x8x72xbf16, #tpu.memory_space<vmem>>, vector<8x8x8xbf16>
    tpu.vector_store %arg14[%c0_137, %c0_138, %c48], %96 {strides = array<i32>} : memref<8x8x72xbf16, #tpu.memory_space<vmem>>, vector<8x8x8xbf16>,
    %c2_139 = arith.constant 2 : index
    %c1_140 = arith.constant 1 : index
    %c0_141 = arith.constant 0 : index
    %98 = vector.load %arg13[%c2_139, %c1_140, %c0_141] : memref<10x10x8xf32, #tpu.memory_space<vmem>>, vector<8x8x8xf32>
    %99 = arith.truncf %98 : vector<8x8x8xf32> to vector<8x8x8xbf16>
    %c0_142 = arith.constant 0 : index
    %c0_143 = arith.constant 0 : index
    %c56 = arith.constant 56 : index
    %100 = vector.load %arg14[%c0_142, %c0_143, %c56] : memref<8x8x72xbf16, #tpu.memory_space<vmem>>, vector<8x8x8xbf16>
    tpu.vector_store %arg14[%c0_142, %c0_143, %c56], %99 {strides = array<i32>} : memref<8x8x72xbf16, #tpu.memory_space<vmem>>, vector<8x8x8xbf16>,
    %c2_144 = arith.constant 2 : index
    %c2_145 = arith.constant 2 : index
    %c0_146 = arith.constant 0 : index
    %101 = vector.load %arg13[%c2_144, %c2_145, %c0_146] : memref<10x10x8xf32, #tpu.memory_space<vmem>>, vector<8x8x8xf32>
    %102 = arith.truncf %101 : vector<8x8x8xf32> to vector<8x8x8xbf16>
    %c0_147 = arith.constant 0 : index
    %c0_148 = arith.constant 0 : index
    %c64 = arith.constant 64 : index
    %103 = vector.load %arg14[%c0_147, %c0_148, %c64] : memref<8x8x72xbf16, #tpu.memory_space<vmem>>, vector<8x8x8xbf16>
    tpu.vector_store %arg14[%c0_147, %c0_148, %c64], %102 {strides = array<i32>} : memref<8x8x72xbf16, #tpu.memory_space<vmem>>, vector<8x8x8xbf16>,
    %c0_149 = arith.constant 0 : index
    %c0_150 = arith.constant 0 : index
    %c0_151 = arith.constant 0 : index
    %104 = vector.load %arg14[%c0_149, %c0_150, %c0_151] : memref<8x8x72xbf16, #tpu.memory_space<vmem>>, vector<8x8x72xbf16>
    %105 = vector.shape_cast %104 : vector<8x8x72xbf16> to vector<64x72xbf16>
    %c0_152 = arith.constant 0 : index
    %c0_153 = arith.constant 0 : index
    %106 = vector.load %arg6[%c0_152, %c0_153] : memref<72x8xbf16, #tpu.memory_space<vmem>>, vector<72x8xbf16>
    %cst_154 = arith.constant dense<0.000000e+00> : vector<64x8xf32>
    %107 = tpu.matmul %105, %106, %cst_154 {dimension_numbers = #tpu.dot_dimension_numbers<[1], [0], [0], [1], [0, 0, 1, 1], [], []>} : vector<64x72xbf16>, vector<72x8xbf16>, vector<64x8xf32> -> vector<64x8xf32>
    %cst_155 = arith.constant dense<0.000000e+00> : vector<8xf32>
    %108 = vector.multi_reduction <add>, %107, %cst_155 [0] : vector<64x8xf32> to vector<8xf32>
    %109 = vector.shape_cast %108 : vector<8xf32> to vector<1x8xf32>
    %110 = arith.mulf %107, %107 : vector<64x8xf32>
    %cst_156 = arith.constant dense<0.000000e+00> : vector<8xf32>
    %111 = vector.multi_reduction <add>, %110, %cst_156 [0] : vector<64x8xf32> to vector<8xf32>
    %112 = vector.shape_cast %111 : vector<8xf32> to vector<1x8xf32>
    %cst_157 = arith.constant 1.562500e-02 : f32
    %113 = vector.broadcast %cst_157 : f32 to vector<1x8xf32>
    %114 = arith.mulf %109, %113 : vector<1x8xf32>
    %cst_158 = arith.constant 1.562500e-02 : f32
    %115 = vector.broadcast %cst_158 : f32 to vector<1x8xf32>
    %116 = arith.mulf %112, %115 : vector<1x8xf32>
    %117 = arith.mulf %114, %114 : vector<1x8xf32>
    %118 = arith.subf %116, %117 : vector<1x8xf32>
    %c0_159 = arith.constant 0 : index
    %c0_160 = arith.constant 0 : index
    %119 = vector.load %arg7[%c0_159, %c0_160] : memref<1x8xf32, #tpu.memory_space<vmem>>, vector<1x8xf32>
    %cst_161 = arith.constant 9.99999974E-6 : f32
    %120 = vector.broadcast %cst_161 : f32 to vector<1x8xf32>
    %121 = arith.addf %118, %120 : vector<1x8xf32>
    %122 = math.rsqrt %121 : vector<1x8xf32>
    %123 = arith.mulf %119, %122 : vector<1x8xf32>
    %c0_162 = arith.constant 0 : index
    %c0_163 = arith.constant 0 : index
    %124 = vector.load %arg8[%c0_162, %c0_163] : memref<1x8xf32, #tpu.memory_space<vmem>>, vector<1x8xf32>
    %125 = arith.mulf %114, %123 : vector<1x8xf32>
    %126 = arith.subf %124, %125 : vector<1x8xf32>
    %127 = vector.broadcast %123 : vector<1x8xf32> to vector<64x8xf32>
    %128 = arith.mulf %107, %127 : vector<64x8xf32>
    %129 = vector.broadcast %126 : vector<1x8xf32> to vector<64x8xf32>
    %130 = arith.addf %128, %129 : vector<64x8xf32>
    %cst_164 = arith.constant 0.000000e+00 : f32
    %131 = vector.broadcast %cst_164 : f32 to vector<64x8xf32>
    %132 = arith.cmpf ogt, %130, %131 : vector<64x8xf32>
    %c0_165 = arith.constant 0 : index
    %c0_166 = arith.constant 0 : index
    %133 = vector.load %arg9[%c0_165, %c0_166] : memref<1x8xf32, #tpu.memory_space<vmem>>, vector<1x8xf32>
    %134 = vector.broadcast %133 : vector<1x8xf32> to vector<64x8xf32>
    %135 = arith.mulf %134, %130 : vector<64x8xf32>
    %136 = arith.select %132, %130, %135 : vector<64x8xi1>, vector<64x8xf32>
    %137 = vector.shape_cast %136 : vector<64x8xf32> to vector<1x8x8x8xf32>
    %c0_167 = arith.constant 0 : index
    %c0_168 = arith.constant 0 : index
    %c0_169 = arith.constant 0 : index
    %c0_170 = arith.constant 0 : index
    %138 = vector.load %arg10[%c0_167, %c0_168, %c0_169, %c0_170] : memref<1x8x8x8xf32, #tpu.memory_space<vmem>>, vector<1x8x8x8xf32>
    tpu.vector_store %arg10[%c0_167, %c0_168, %c0_169, %c0_170], %137 {strides = array<i32>} : memref<1x8x8x8xf32, #tpu.memory_space<vmem>>, vector<1x8x8x8xf32>,
    return
  }
  func.func @transform_0(%arg0: i32) -> (i32, i32, i32, i32, i32) {
    %c0_i32 = arith.constant 0 : i32
    %c0_i32_0 = arith.constant 0 : i32
    %c0_i32_1 = arith.constant 0 : i32
    %c0_i32_2 = arith.constant 0 : i32
    %c0_i32_3 = arith.constant 0 : i32
    return %arg0, %c0_i32, %c0_i32_0, %c0_i32_1, %c0_i32_2 : i32, i32, i32, i32, i32
  }
  func.func @transform_1(%arg0: i32) -> (i32, i32) {
    %c0_i32 = arith.constant 0 : i32
    %c0_i32_0 = arith.constant 0 : i32
    %c0_i32_1 = arith.constant 0 : i32
    return %c0_i32, %c0_i32_0 : i32, i32
  }
  func.func @transform_2(%arg0: i32) -> (i32, i32) {
    %c0_i32 = arith.constant 0 : i32
    %c0_i32_0 = arith.constant 0 : i32
    %c0_i32_1 = arith.constant 0 : i32
    return %c0_i32, %c0_i32_0 : i32, i32
  }
  func.func @transform_3(%arg0: i32) -> (i32, i32) {
    %c0_i32 = arith.constant 0 : i32
    %c0_i32_0 = arith.constant 0 : i32
    %c0_i32_1 = arith.constant 0 : i32
    return %c0_i32, %c0_i32_0 : i32, i32
  }
  func.func @transform_4(%arg0: i32) -> (i32, i32) {
    %c0_i32 = arith.constant 0 : i32
    %c0_i32_0 = arith.constant 0 : i32
    %c0_i32_1 = arith.constant 0 : i32
    return %c0_i32, %c0_i32_0 : i32, i32
  }
  func.func @transform_5(%arg0: i32) -> (i32, i32) {
    %c0_i32 = arith.constant 0 : i32
    %c0_i32_0 = arith.constant 0 : i32
    %c0_i32_1 = arith.constant 0 : i32
    return %c0_i32, %c0_i32_0 : i32, i32
  }
  func.func @transform_6(%arg0: i32) -> (i32, i32) {
    %c0_i32 = arith.constant 0 : i32
    %c0_i32_0 = arith.constant 0 : i32
    %c0_i32_1 = arith.constant 0 : i32
    return %c0_i32, %c0_i32_0 : i32, i32
  }
  func.func @transform_7(%arg0: i32) -> (i32, i32) {
    %c0_i32 = arith.constant 0 : i32
    %c0_i32_0 = arith.constant 0 : i32
    %c0_i32_1 = arith.constant 0 : i32
    return %c0_i32, %c0_i32_0 : i32, i32
  }
  func.func @transform_8(%arg0: i32) -> (i32, i32) {
    %c0_i32 = arith.constant 0 : i32
    %c0_i32_0 = arith.constant 0 : i32
    %c0_i32_1 = arith.constant 0 : i32
    return %c0_i32, %c0_i32_0 : i32, i32
  }
  func.func @transform_9(%arg0: i32) -> (i32, i32, i32, i32) {
    %c0_i32 = arith.constant 0 : i32
    %c0_i32_0 = arith.constant 0 : i32
    %c0_i32_1 = arith.constant 0 : i32
    %c0_i32_2 = arith.constant 0 : i32
    return %arg0, %c0_i32, %c0_i32_0, %c0_i32_1 : i32, i32, i32, i32
  }
}

</mosaic_0001>

<bundles_post_ra>
// kernel: tpu_custom_call.1
= control target key start
LH: loop header
LB: loop body
LE: loop exit
PB: predicated region body
PF: predicated region fallthrough
CT: control target
= control target key end

     0   :  { %14 = vsyncpa [#allocation7], 0  ;;  %s3611_s0 = inlined_call_operand.vmem [shape: f32[2,4,8,8,4], index: 0, kind: input, shape index: {}]   ;;  %s3612_s1 = inlined_call_operand.vmem [shape: bf16[36,8], index: 1, kind: input, shape index: {}]   ;;  %s3613_s2 = inlined_call_operand.vmem [shape: f32[1,8], index: 2, kind: input, shape index: {}]   ;;  %s3614_s3 = inlined_call_operand.vmem [shape: f32[1,8], index: 3, kind: input, shape index: {}]   ;;  %s3615_s4 = inlined_call_operand.vmem [shape: f32[1,8], index: 4, kind: input, shape index: {}]   ;;  %s3616_s5 = inlined_call_operand.vmem [shape: bf16[72,8], index: 5, kind: input, shape index: {}]   ;;  %s3617_s6 = inlined_call_operand.vmem [shape: f32[1,8], index: 6, kind: input, shape index: {}]   ;;  %s3618_s7 = inlined_call_operand.vmem [shape: f32[1,8], index: 7, kind: input, shape index: {}]   ;;  %s3619_s8 = inlined_call_operand.vmem [shape: f32[1,8], index: 8, kind: input, shape index: {}]   ;;  %s3620_s9 = inlined_call_operand.hbm [shape: f32[2,8,8,8], index: 9, kind: output, shape index: {}]  }
   0x1   :  { %16 = vsyncpa [#allocation7 + $0x1], 0  ;;  %s2862_s30 = smov 0   ;;  %s2864_s10 = smov 0  }
   0x2   :  { %s2866_s11 = smov 0   ;;  %s2868_s12 = smov 0  }
   0x3 LB: > { %s2883_s13 = sadd.s32 4294967295, %s2795_s12   ;;  %s2314_s14 = sadd.s32 4294967294, %s2795_s12   ;;  %s2795_s12 = sphi %s2868_s12, %s3626_s12   ;;  %s2791_s11 = sphi %s2866_s11, %s3625_s11   ;;  %s2787_s10 = sphi %s2864_s10, %s3624_s10   ;;  %s2783_s30 = sphi %s2862_s30, %s3623_s30  }
   0x4   : > { %s2887_s15 = sadd.s32 1, %s2795_s12   ;;  %s223_s16 = sadd.s32 1, %s2791_s11 }
   0x5   : > { %s220_s17 = ssub.s32 %s2795_s12, %s2887_s15  ;;  %p233_p0 = scmp.ne.s32.totalorder %s2791_s11, %s2787_s10 }
   0x6   : > { %p221_p1 = scmp.eq.s32.totalorder %s220_s17, 0  ;;  %p234_p2 = scmp.eq.s32.totalorder %s2883_s13, 1 }
   0x7   : > { %p239_p3 = scmp.ne.s32.totalorder %s2787_s10, %s2783_s30  ;;  %p240_p4 = scmp.eq.s32.totalorder %s2314_s14, 1 }
   0x8   : > { %s2898_s18 = scalar_select %p221_p1, %s2791_s11, %s223_s16  }
   0x9   : > { %p2900_p5 = por %p234_p2, %p233_p0  ;;  %p2904_p6 = por %p240_p4, %p239_p3 }
   0xa   : > { %p2317_p7 = scmp.ge.s32.totalorder %s2795_s12, 1  ;;  %p290_p8 = scmp.lt.s32.totalorder %s2795_s12, 3 }
   0xc   : > { %p291_p9 = pnand %p2317_p7, %p290_p8 }
   0xd   : > { %vm364_vm0 = vcmask (!%p291_p9), 31744   ;;  %vm422_vm1 = vcmask (!%p291_p9), 25600   ;;  %vm427_vm2 = vcmask (!%p291_p9), 24576   ;;  %p326_p10 = scmp.lt.s32.totalorder (!%p291_p9), %s2883_s13, 1  ;;  %v2797_v0 = vmov (!%p291_p9), 0.0   ;;  %s2798_s26 = smov (!%p291_p9), 4  }
   0xe   : > { %294 = sbr.rel (%p291_p9) target bundleno = 1094 (0x446), region = 56  ;;  %421 = vst.msk [vmem:[#allocation2] sm:$0xff] (!%p291_p9), %vm364_vm0, %v2797_v0  ;;  %425 = vst.msk [vmem:[#allocation2 + $0x90] sm:$0xff] (!%p291_p9), %vm364_vm0, %v2797_v0  ;;  %s2799_s27 = smov (!%p291_p9), 8   ;;  %vm473_vm3 = vcmask (!%p291_p9), 27648   ;;  %vm1128_vm4 = vcmask (!%p291_p9), 1041408  }
   0xf   : > { %423 = vst.msk [vmem:[#allocation2 + $0x8] sm:$0x3] (!%p291_p9), %vm422_vm1, %v2797_v0  ;;  %426 = vst.msk [vmem:[#allocation2 + $0x98] sm:$0x3] (!%p291_p9), %vm422_vm1, %v2797_v0  ;;  %s2800_s28 = smov (!%p291_p9), 12   ;;  %s2801_s29 = smov (!%p291_p9), 16  }
  0x10   : > { %429 = vst.msk [vmem:[#allocation2 + $0x10] sm:$0x1] (!%p291_p9), %vm427_vm2, %v2797_v0  ;;  %430 = vst.msk [vmem:[#allocation2 + $0x20] sm:$0x1] (!%p291_p9), %vm427_vm2, %v2797_v0  ;;  %s2802_s14 = smov (!%p291_p9), 20   ;;  %s2803_s16 = smov (!%p291_p9), 24  }
  0x11   : > { %431 = vst.msk [vmem:[#allocation2 + $0x30] sm:$0x1] (!%p291_p9), %vm427_vm2, %v2797_v0  ;;  %432 = vst.msk [vmem:[#allocation2 + $0x40] sm:$0x1] (!%p291_p9), %vm427_vm2, %v2797_v0  ;;  %s2804_s17 = smov (!%p291_p9), 28   ;;  %vm546_vm5 = vcmask (!%p291_p9), 60448  }
  0x12   : > { %433 = vst.msk [vmem:[#allocation2 + $0x50] sm:$0x1] (!%p291_p9), %vm427_vm2, %v2797_v0  ;;  %434 = vst.msk [vmem:[#allocation2 + $0x60] sm:$0x1] (!%p291_p9), %vm427_vm2, %v2797_v0  ;;  %vm619_vm6 = vcmask (!%p291_p9), 93248   ;;  %vm692_vm7 = vcmask (!%p291_p9), 126048  }
  0x13   : > { %435 = vst.msk [vmem:[#allocation2 + $0x70] sm:$0x1] (!%p291_p9), %vm427_vm2, %v2797_v0  ;;  %436 = vst.msk [vmem:[#allocation2 + $0x80] sm:$0x1] (!%p291_p9), %vm427_vm2, %v2797_v0  ;;  %vm765_vm8 = vcmask (!%p291_p9), 158848   ;;  %vm838_vm9 = vcmask (!%p291_p9), 191648  }
  0x14   : > { %439 = vst.msk [vmem:[#allocation2 + $0x19] sm:$0x1] (!%p291_p9), %vm427_vm2, %v2797_v0  ;;  %440 = vst.msk [vmem:[#allocation2 + $0x29] sm:$0x1] (!%p291_p9), %vm427_vm2, %v2797_v0  ;;  %vm912_vm10 = vcmask (!%p291_p9), 224448   ;;  %vm985_vm11 = vcmask (!%p291_p9), 257248  }
  0x15   : > { %441 = vst.msk [vmem:[#allocation2 + $0x39] sm:$0x1] %vm427_vm2, %v2797_v0  ;;  %442 = vst.msk [vmem:[#allocation2 + $0x49] sm:$0x1] %vm427_vm2, %v2797_v0  ;;  %s327_s21 = scalar_select %p326_p10, %s2883_s13, 1  ;;  %vm1058_vm12 = vcmask 290048  }
  0x16   : > { %443 = vst.msk [vmem:[#allocation2 + $0x59] sm:$0x1] %vm427_vm2, %v2797_v0  ;;  %444 = vst.msk [vmem:[#allocation2 + $0x69] sm:$0x1] %vm427_vm2, %v2797_v0  ;;  %v482_v10 = vld [vmem:[#allocation2 + $0x1] sm:$0xff]  ;;  %vm1115_vm13 = vcmask 293888  }
  0x17   : > { %445 = vst.msk [vmem:[#allocation2 + $0x79] sm:$0x1] %vm427_vm2, %v2797_v0  ;;  %446 = vst.msk [vmem:[#allocation2 + $0x89] sm:$0x1] %vm427_vm2, %v2797_v0  ;;  %s2480_s22 = sshll.u32 %s327_s21, 8  ;;  %v2481_v17 = vpack.c.bf16 %v482_v10, %v482_v10  ;;  %vm1197_vm14 = vcmask 64512  }
  0x18   : > { %438 = vst.msk [vmem:[#allocation2 + $0x9] sm:$0x1] %vm427_vm2, %v2797_v0  ;;  %428 = vst.msk [vmem:[#allocation2] sm:$0x1] %vm427_vm2, %v2797_v0  ;;  %s2963_s25 = scalar_lea.vmem %s3611_s0, %s2480_s22  ;;  %vm1324_vm15 = vcmask 57344   ;;  %vm1443_vm1 = vcmask 126016  }
  0x19   : > { %447 = vst.msk [vmem:[#allocation2 + $0x99] sm:$0x1] %vm427_vm2, %v2797_v0  ;;  %437 = vst.msk [vmem:[#allocation2 + $0x90] sm:$0x1] %vm427_vm2, %v2797_v0  ;;  %v333_v1 = vld [vmem:[%s2963_s25 + $0x8] sm:$0xff]  ;;  %v334_v8 = vld [vmem:[%s2963_s25 + $0x10] sm:$0xff]  ;;  %522 = vrot.lane.b32.xlu0 %v2481_v17, %s2798_s26 }
  0x1a   : > { %v341_v2 = vld [vmem:[%s2963_s25 + $0x48] sm:$0xff]  ;;  %v372_v5 = vsel %vm364_vm0, %v333_v1, -inf  ;;  %v342_v9 = vld [vmem:[%s2963_s25 + $0x50] sm:$0xff]  ;;  %v379_v15 = vsel %vm364_vm0, %v334_v8, -inf  ;;  %v332_v22 = vld [vmem:[%s2963_s25] sm:$0xff]  ;;  %1318 = vst.msk [vmem:[#allocation4] sm:$0xff] %vm1197_vm14, %v2797_v0 }
  0x1b   : > { %v349_v3 = vld [vmem:[%s2963_s25 + $0x88] sm:$0xff]  ;;  %v373_v6 = vsel %vm364_vm0, %v341_v2, -inf  ;;  %v350_v13 = vld [vmem:[%s2963_s25 + $0x90] sm:$0xff]  ;;  %v380_v16 = vsel %vm364_vm0, %v342_v9, -inf  ;;  %v340_v23 = vld [vmem:[%s2963_s25 + $0x40] sm:$0xff]  ;;  %v365_v28 = vsel %vm364_vm0, %v332_v22, -inf }
  0x1c   : > { %v357_v4 = vld [vmem:[%s2963_s25 + $0xc8] sm:$0xff]  ;;  %v375_v7 = vsel %vm364_vm0, %v349_v3, -inf  ;;  %v374_v11 = vmax.f32 %v372_v5, %v373_v6  ;;  %v358_v14 = vld [vmem:[%s2963_s25 + $0xd0] sm:$0xff]  ;;  %v381_v19 = vmax.f32 %v379_v15, %v380_v16  ;;  %v382_v20 = vsel %vm364_vm0, %v350_v13, -inf  ;;  %v348_v26 = vld [vmem:[%s2963_s25 + $0x80] sm:$0xff]  ;;  %1322 = vst.msk [vmem:[#allocation4 + $0x90] sm:$0xff] %vm1197_vm14, %v2797_v0 }
  0x1d   : > { %v377_v12 = vsel %vm364_vm0, %v357_v4, -inf  ;;  %v384_v21 = vsel %vm364_vm0, %v358_v14, -inf  ;;  %v356_v27 = vld [vmem:[%s2963_s25 + $0xc0] sm:$0xff]  ;;  %v366_v29 = vsel %vm364_vm0, %v340_v23, -inf  ;;  %v335_v30 = vld [vmem:[%s2963_s25 + $0x18] sm:$0xff]  ;;  %v368_v33 = vsel %vm364_vm0, %v348_v26, -inf }
  0x1e   : > { %v376_v24 = vmax.f32 %v374_v11, %v375_v7  ;;  %v383_v31 = vmax.f32 %v381_v19, %v382_v20  ;;  %v367_v32 = vmax.f32 %v365_v28, %v366_v29  ;;  %v370_v34 = vsel %vm364_vm0, %v356_v27, -inf  ;;  %v343_v35 = vld [vmem:[%s2963_s25 + $0x58] sm:$0xff]  ;;  %v336_v42 = vld [vmem:[%s2963_s25 + $0x20] sm:$0xff]  ;;  %v338_v49 = vld [vmem:[%s2963_s25 + $0x30] sm:$0xff]  ;;  %1334 = vst.msk [vmem:[#allocation4 + $0x90] sm:$0x1] %vm1324_vm15, %v2797_v0 }
  0x1f   : > { %v555_v18 = vld [vmem:[#allocation2 + $0x2] sm:$0xff]  ;;  %v351_v36 = vld [vmem:[%s2963_s25 + $0x98] sm:$0xff]  ;;  %v386_v39 = vsel %vm364_vm0, %v335_v30, -inf  ;;  %v387_v40 = vsel %vm364_vm0, %v343_v35, -inf  ;;  %v346_v50 = vld [vmem:[%s2963_s25 + $0x70] sm:$0xff]  ;;  %v393_v52 = vsel %vm364_vm0, %v336_v42, -inf }
  0x20   : > { %v2489_v25 = vpack.c.bf16 %v555_v18, %v555_v18  ;;  %v359_v37 = vld [vmem:[%s2963_s25 + $0xd8] sm:$0xff]  ;;  %v378_v38 = vmax.f32 %v376_v24, %v377_v12  ;;  %v389_v41 = vsel %vm364_vm0, %v351_v36, -inf  ;;  %v344_v43 = vld [vmem:[%s2963_s25 + $0x60] sm:$0xff]  ;;  %v385_v45 = vmax.f32 %v383_v31, %v384_v21  ;;  %v354_v55 = vld [vmem:[%s2963_s25 + $0xb0] sm:$0xff]  ;;  %1325 = vst.msk [vmem:[#allocation4] sm:$0x1] %vm1324_vm15, %v2797_v0 }
  0x21   : > { %v352_v44 = vld [vmem:[%s2963_s25 + $0xa0] sm:$0xff]  ;;  %v369_v46 = vmax.f32 %v367_v32, %v368_v33  ;;  %v388_v47 = vmax.f32 %v386_v39, %v387_v40  ;;  %v391_v51 = vsel %vm364_vm0, %v359_v37, -inf  ;;  %v394_v53 = vsel %vm364_vm0, %v344_v43, -inf  ;;  %v362_v56 = vld [vmem:[%s2963_s25 + $0xf0] sm:$0xff]  ;;  %v337_v61 = vld [vmem:[%s2963_s25 + $0x28] sm:$0xff]  ;;  %s2809_s23 = smov 64  }
  0x22   : > { %v360_v48 = vld [vmem:[%s2963_s25 + $0xe0] sm:$0xff]  ;;  %450 = vst.msk [vmem:[#allocation2 + $0x21] sm:$0xff] %vm364_vm0, %v378_v38  ;;  %v396_v54 = vsel %vm364_vm0, %v352_v44, -inf  ;;  %595 = vrot.lane.b32.xlu0 %v2489_v25, %s2799_s27  ;;  %451 = vst.msk [vmem:[#allocation2 + $0x31] sm:$0xff] %vm364_vm0, %v385_v45  ;;  %v395_v59 = vmax.f32 %v393_v52, %v394_v53  ;;  %v407_v60 = vsel %vm364_vm0, %v338_v49, -inf  ;;  %v345_v62 = vld [vmem:[%s2963_s25 + $0x68] sm:$0xff] }
  0x23   : > { %v371_v57 = vmax.f32 %v369_v46, %v370_v34  ;;  %v390_v58 = vmax.f32 %v388_v47, %v389_v41  ;;  %v353_v63 = vld [vmem:[%s2963_s25 + $0xa8] sm:$0xff]  ;;  %v398_v1 = vsel %vm364_vm0, %v360_v48, -inf  ;;  %v408_v2 = vsel %vm364_vm0, %v346_v50, -inf  ;;  %v339_v6 = vld [vmem:[%s2963_s25 + $0x38] sm:$0xff]  ;;  %v457_v17 = vld [vmem:[#allocation2] sm:$0xff]  ;;  %s2609_s21 = sshll.u32 %s2883_s13, 10 }
  0x24   : > { %v410_v3 = vsel %vm364_vm0, %v354_v55, -inf  ;;  %v361_v4 = vld [vmem:[%s2963_s25 + $0xe8] sm:$0xff]  ;;  %v400_v5 = vsel %vm364_vm0, %v337_v61, -inf  ;;  %v397_v8 = vmax.f32 %v395_v59, %v396_v54  ;;  %v409_v9 = vmax.f32 %v407_v60, %v408_v2  ;;  %v347_v11 = vld [vmem:[%s2963_s25 + $0x78] sm:$0xff]  ;;  %1326 = vst.msk [vmem:[#allocation4 + $0x10] sm:$0x1] %vm1324_vm15, %v2797_v0 }
  0x25   : > { %449 = vst.msk [vmem:[#allocation2 + $0x11] sm:$0xff] %vm364_vm0, %v371_v57  ;;  %v392_v7 = vmax.f32 %v390_v58, %v391_v51  ;;  %v401_v10 = vsel %vm364_vm0, %v345_v62, -inf  ;;  %v355_v12 = vld [vmem:[%s2963_s25 + $0xb8] sm:$0xff]  ;;  %v412_v13 = vsel %vm364_vm0, %v362_v56, -inf  ;;  %v403_v15 = vsel %vm364_vm0, %v353_v63, -inf  ;;  %v2713_v63 = vld [vmem:[%s3612_s1] sm:$0xff]  }
  0x26   : > { %v402_v14 = vmax.f32 %v400_v5, %v401_v10  ;;  %v414_v16 = vsel %vm364_vm0, %v339_v6, -inf  ;;  %v399_v18 = vmax.f32 %v397_v8, %v398_v1  ;;  %v411_v19 = vmax.f32 %v409_v9, %v410_v3  ;;  %v363_v21 = vld [vmem:[%s2963_s25 + $0xf8] sm:$0xff]  ;;  %2626 = vmatprep.subr.bf16.mxu0 %v2713_v63  ;;  %v2714_v2 = vld [vmem:[%s3612_s1 + $0x8] sm:$0xff]   ;;  %s2805_s25 = smov 32   ;;  %1327 = vst.msk [vmem:[#allocation4 + $0x20] sm:$0x1] %vm1324_vm15, %v2797_v0 }
  0x27   : > { %452 = vst.msk [vmem:[#allocation2 + $0x41] sm:$0xff] %vm364_vm0, %v392_v7  ;;  %v405_v20 = vsel %vm364_vm0, %v361_v4, -inf  ;;  %v415_v22 = vsel %vm364_vm0, %v347_v11, -inf  ;;  %v417_v25 = vsel %vm364_vm0, %v355_v12, -inf  ;;  %v465_v29 = vpack.c.bf16 %v457_v17, %v457_v17  ;;  %2627 = vmatpush3.bf16.msra.mxu0 %v2713_v63 }
  0x28   : > { %v404_v23 = vmax.f32 %v402_v14, %v403_v15  ;;  %v416_v24 = vmax.f32 %v414_v16, %v415_v22  ;;  %453 = vst.msk [vmem:[#allocation2 + $0x51] sm:$0xff] %vm364_vm0, %v399_v18  ;;  %v413_v28 = vmax.f32 %v411_v19, %v412_v13  ;;  %v419_v35 = vsel %vm364_vm0, %v363_v21, -inf  ;;  %2628 = vmatprep.subr.bf16.mxu0 %v2714_v2  ;;  %v2716_v3 = vld [vmem:[%s3612_s1 + $0x10] ss:$0 sps:$4 sm:$0x33]  }
  0x29   : > { %v484_v26 = vld [vmem:[#allocation2 + $0x21] sm:$0xff]  ;;  %v485_v31 = vld [vmem:[#allocation2 + $0x31] sm:$0xff]  ;;  %474 = vst.msk [vmem:[#allocation3] sm:$0xf] %vm473_vm3, %v465_v29  ;;  %v1130_v5 = vsel %vm1128_vm4, %v2716_v3, 0  ;;  %vm1370_vm2 = vcmask 60416  }
  0x2a   : > { %v629_v27 = vld [vmem:[#allocation2 + $0x20] sm:$0xff]  ;;  %v3035_v30 = vpack.c.bf16 %v484_v26, %v484_v26  ;;  %v630_v33 = vld [vmem:[#allocation2 + $0x30] sm:$0xff]  ;;  %v406_v34 = vmax.f32 %v404_v23, %v405_v20  ;;  %455 = vst.msk [vmem:[#allocation2 + $0x71] sm:$0xff] %vm364_vm0, %v413_v28  ;;  %v418_v37 = vmax.f32 %v416_v24, %v417_v25  ;;  %v2484_v38 = vpack.c.bf16 %v485_v31, %v485_v31 }
  0x2b   : > { %v2498_v32 = vpack.c.bf16 %v629_v27, %v629_v27  ;;  %v2499_v36 = vpack.c.bf16 %v630_v33, %v630_v33  ;;  %v557_v40 = vld [vmem:[#allocation2 + $0x22] sm:$0xff]  ;;  %v558_v51 = vld [vmem:[#allocation2 + $0x32] sm:$0xff]  ;;  %2629 = vmatpush3.bf16.msra.mxu0 %v2714_v2  ;;  %1328 = vst.msk [vmem:[#allocation4 + $0x30] sm:$0x1] %vm1324_vm15, %v2797_v0  ;;  %1329 = vst.msk [vmem:[#allocation4 + $0x40] sm:$0x1] %vm1324_vm15, %v2797_v0 }
  0x2c   : > { %526 = vrot.lane.b32.xlu1 %v3035_v30, %s2798_s26  ;;  %v483_v39 = vld [vmem:[#allocation2 + $0x11] sm:$0xff]  ;;  %454 = vst.msk [vmem:[#allocation2 + $0x61] sm:$0xff] %vm364_vm0, %v406_v34  ;;  %v420_v45 = vmax.f32 %v418_v37, %v419_v35  ;;  %v2491_v47 = vpack.c.bf16 %v557_v40, %v557_v40  ;;  %v2492_v56 = vpack.c.bf16 %v558_v51, %v558_v51 }
  0x2d   : > { %v628_v41 = vld [vmem:[#allocation2 + $0x10] sm:$0xff]  ;;  %476 = vst.msk [vmem:[#allocation3 + $0x8] sm:$0xf] %vm473_vm3, %v2498_v32  ;;  %v2482_v42 = vpack.c.bf16 %v483_v39, %v483_v39  ;;  %477 = vst.msk [vmem:[#allocation3 + $0xc] sm:$0xf] %vm473_vm3, %v2499_v36  ;;  %2658 = vmatprep.subr.msk.bf16.mxu0 %vm1128_vm4, %v2716_v3 }
  0x2e   : > { %v556_v43 = vld [vmem:[#allocation2 + $0x12] sm:$0xff]  ;;  %v2497_v44 = vpack.c.bf16 %v628_v41, %v628_v41  ;;  %v631_v46 = vld [vmem:[#allocation2 + $0x40] sm:$0xff]  ;;  %456 = vst.msk [vmem:[#allocation2 + $0x81] sm:$0xff] %vm364_vm0, %v420_v45  ;;  %vm1319_vm0 = vcmask 58368  }
  0x2f   : > { %524 = vrot.lane.b32.xlu0 %v2482_v42, %s2798_s26  ;;  %v2500_v48 = vpack.c.bf16 %v631_v46, %v631_v46  ;;  %v2490_v49 = vpack.c.bf16 %v556_v43, %v556_v43  ;;  %v851_v50 = vld [vmem:[#allocation2 + $0x50] sm:$0xff]  ;;  %v704_v58 = vld [vmem:[#allocation2 + $0x41] sm:$0xff]  ;;  %2631 = vmatpush3.bf16.msra.mxu0 %v1130_v5  ;;  %1330 = vst.msk [vmem:[#allocation4 + $0x50] sm:$0x1] %vm1324_vm15, %v2797_v0  ;;  %1331 = vst.msk [vmem:[#allocation4 + $0x60] sm:$0x1] %vm1324_vm15, %v2797_v0 }
  0x30   : > { %475 = vst.msk [vmem:[#allocation3 + $0x4] sm:$0xf] %vm473_vm3, %v2497_v44  ;;  %528 = vrot.lane.b32.xlu1 %v2484_v38, %s2798_s26  ;;  %v3049_v52 = vpack.c.bf16 %v851_v50, %v851_v50  ;;  %v2508_v59 = vpack.c.bf16 %v704_v58, %v704_v58  ;;  %v777_v60 = vld [vmem:[#allocation2 + $0x42] sm:$0xff]  ;;  %v924_v62 = vld [vmem:[#allocation2 + $0x51] sm:$0xff] }
  0x31   : > { %478 = vst.msk [vmem:[#allocation3 + $0x10] sm:$0xf] %vm473_vm3, %v2500_v48  ;;  %v634_v53 = vld [vmem:[#allocation2 + $0x70] sm:$0xff]  ;;  %v2516_v61 = vpack.c.bf16 %v777_v60, %v777_v60  ;;  %v2532_v1 = vpack.c.bf16 %v924_v62, %v924_v62 }
  0x32   : > { %v3053_v55 = vpack.c.bf16 %v634_v53, %v634_v53  ;;  %479 = vst.msk [vmem:[#allocation3 + $0x14] sm:$0xf] %vm473_vm3, %v3049_v52  ;;  %v997_v6 = vld [vmem:[#allocation2 + $0x52] sm:$0xff] }
  0x33   : > { %599 = vrot.lane.b32.xlu0 %v2491_v47, %s2799_s27  ;;  %v633_v54 = vld [vmem:[#allocation2 + $0x60] sm:$0xff]  ;;  %v2540_v8 = vpack.c.bf16 %v997_v6, %v997_v6  ;;  %v489_v9 = vld [vmem:[#allocation2 + $0x71] sm:$0xff]  ;;  %1332 = vst.msk [vmem:[#allocation4 + $0x70] sm:$0x1] %vm1324_vm15, %v2797_v0  ;;  %1333 = vst.msk [vmem:[#allocation4 + $0x80] sm:$0x1] %vm1324_vm15, %v2797_v0 }
  0x34   : > { %597 = vrot.lane.b32.xlu1 %v2490_v49, %s2799_s27  ;;  %v3058_v57 = vpack.c.bf16 %v633_v54, %v633_v54  ;;  %481 = vst.msk [vmem:[#allocation3 + $0x1c] sm:$0xf] %vm473_vm3, %v3053_v55  ;;  %v488_v4 = vld [vmem:[#allocation2 + $0x61] sm:$0xff]  ;;  %v2488_v10 = vpack.c.bf16 %v489_v9, %v489_v9  ;;  %v562_v13 = vld [vmem:[#allocation2 + $0x72] sm:$0xff] }
  0x35   : > { %v2487_v7 = vpack.c.bf16 %v488_v4, %v488_v4  ;;  %v561_v11 = vld [vmem:[#allocation2 + $0x62] sm:$0xff]  ;;  %v2496_v14 = vpack.c.bf16 %v562_v13, %v562_v13  ;;  %v855_v21 = vld [vmem:[#allocation2 + $0x90] sm:$0xff]  ;;  %1336 = vst.msk [vmem:[#allocation4 + $0x19] sm:$0x1] %vm1324_vm15, %v2797_v0  ;;  %1337 = vst.msk [vmem:[#allocation4 + $0x29] sm:$0x1] %vm1324_vm15, %v2797_v0 }
  0x36   : > { %480 = vst.msk [vmem:[#allocation3 + $0x18] sm:$0xf] %vm473_vm3, %v3058_v57  ;;  %v2495_v12 = vpack.c.bf16 %v561_v11, %v561_v11  ;;  %v635_v15 = vld [vmem:[#allocation2 + $0x80] sm:$0xff]  ;;  %v2528_v23 = vpack.c.bf16 %v855_v21, %v855_v21  ;;  %v928_v25 = vld [vmem:[#allocation2 + $0x91] sm:$0xff]  ;;  %vm1516_vm3 = vcmask 191616  }
  0x37   : > { %668 = vrot.lane.b32.xlu0 %v2497_v44, %s2800_s28  ;;  %v2504_v16 = vpack.c.bf16 %v635_v15, %v635_v15  ;;  %v708_v17 = vld [vmem:[#allocation2 + $0x81] sm:$0xff]  ;;  %v2536_v26 = vpack.c.bf16 %v928_v25, %v928_v25  ;;  %v1001_v29 = vld [vmem:[#allocation2 + $0x92] sm:$0xff]  ;;  %1338 = vst.msk [vmem:[#allocation4 + $0x39] sm:$0x1] %vm1324_vm15, %v2797_v0  ;;  %1339 = vst.msk [vmem:[#allocation4 + $0x49] sm:$0x1] %vm1324_vm15, %v2797_v0 }
  0x38   : > { %601 = vrot.lane.b32.xlu1 %v2492_v56, %s2799_s27  ;;  %v2512_v18 = vpack.c.bf16 %v708_v17, %v708_v17  ;;  %v781_v19 = vld [vmem:[#allocation2 + $0x82] sm:$0xff]  ;;  %v2544_v31 = vpack.c.bf16 %v1001_v29, %v1001_v29  ;;  %1340 = vst.msk [vmem:[#allocation4 + $0x59] sm:$0x1] %vm1324_vm15, %v2797_v0  ;;  %1341 = vst.msk [vmem:[#allocation4 + $0x69] sm:$0x1] %vm1324_vm15, %v2797_v0 }
  0x39   : > { %v2520_v20 = vpack.c.bf16 %v781_v19, %v781_v19  ;;  %1342 = vst.msk [vmem:[#allocation4 + $0x79] sm:$0x1] %vm1324_vm15, %v2797_v0  ;;  %1343 = vst.msk [vmem:[#allocation4 + $0x89] sm:$0x1] %vm1324_vm15, %v2797_v0 }
  0x3a   : > { %1320 = vst.msk [vmem:[#allocation4 + $0x8] sm:$0x3] %vm1319_vm0, %v2797_v0  ;;  %1323 = vst.msk [vmem:[#allocation4 + $0x98] sm:$0x3] %vm1319_vm0, %v2797_v0  ;;  %vm1735_vm0 = vcmask 388416  }
  0x3b   : > { %672 = vrot.lane.b32.xlu0 %v2499_v36, %s2800_s28  ;;  %1335 = vst.msk [vmem:[#allocation4 + $0x9] sm:$0x1] %vm1324_vm15, %v2797_v0  ;;  %1344 = vst.msk [vmem:[#allocation4 + $0x99] sm:$0x1] %vm1324_vm15, %v2797_v0  ;;  %vm1662_vm15 = vcmask 322816  }
  0x3c   : > { %670 = vrot.lane.b32.xlu1 %v2498_v32, %s2800_s28 }
  0x3f   : > { %741 = vrot.lane.b32.xlu0 %v2482_v42, %s2801_s29 }
  0x40   : > { %674 = vrot.lane.b32.xlu1 %v2500_v48, %s2800_s28 }
  0x43   : > { %745 = vrot.lane.b32.xlu0 %v2484_v38, %s2801_s29 }
  0x44   : > { %743 = vrot.lane.b32.xlu1 %v3035_v30, %s2801_s29 }
  0x47   : > { %814 = vrot.lane.b32.xlu0 %v2490_v49, %s2802_s14 }
  0x48   : > { %747 = vrot.lane.b32.xlu1 %v2508_v59, %s2801_s29 }
  0x4b   : > { %818 = vrot.lane.b32.xlu0 %v2492_v56, %s2802_s14 }
  0x4c   : > { %816 = vrot.lane.b32.xlu1 %v2491_v47, %s2802_s14 }
  0x4f   : > { %888 = vrot.lane.b32.xlu0 %v2498_v32, %s2803_s16 }
  0x50   : > { %820 = vrot.lane.b32.xlu1 %v2516_v61, %s2802_s14 }
  0x53   : > { %892 = vrot.lane.b32.xlu0 %v2500_v48, %s2803_s16 }
  0x54   : > { %890 = vrot.lane.b32.xlu1 %v2499_v36, %s2803_s16 }
  0x57   : > { %961 = vrot.lane.b32.xlu0 %v3035_v30, %s2804_s17 }
  0x58   : > { %894 = vrot.lane.b32.xlu1 %v3049_v52, %s2803_s16 }
  0x5b   : > { %965 = vrot.lane.b32.xlu0 %v2508_v59, %s2804_s17 }
  0x5c   : > { %963 = vrot.lane.b32.xlu1 %v2484_v38, %s2804_s17 }
  0x5f   : > { %1034 = vrot.lane.b32.xlu0 %v2491_v47, %s2805_s25 }
  0x60   : > { %967 = vrot.lane.b32.xlu1 %v2532_v1, %s2804_s17 }
  0x63   : > { %530 = vrot.lane.b32.xlu0 %v2508_v59, %s2798_s26 }
  0x64   : > { %1036 = vrot.lane.b32.xlu1 %v2492_v56, %s2805_s25 }
  0x67   : > { %1038 = vrot.lane.b32.xlu0 %v2516_v61, %s2805_s25 }
  0x68   : > { %532 = vrot.lane.b32.xlu1 %v2532_v1, %s2798_s26 }
  0x6b   : > { %534 = vrot.lane.b32.xlu0 %v2487_v7, %s2798_s26 }
  0x6c   : > { %1040 = vrot.lane.b32.xlu1 %v2540_v8, %s2805_s25 }
  0x6f   : > { %603 = vrot.lane.b32.xlu0 %v2516_v61, %s2799_s27 }
  0x70   : > { %536 = vrot.lane.b32.xlu1 %v2488_v10, %s2798_s26  ;;  %s2806_s26 = smov 48  }
  0x73   : > { %607 = vrot.lane.b32.xlu0 %v2495_v12, %s2799_s27 }
  0x74   : > { %605 = vrot.lane.b32.xlu1 %v2540_v8, %s2799_s27 }
  0x77   : > { %676 = vrot.lane.b32.xlu0 %v3049_v52, %s2800_s28 }
  0x78   : > { %609 = vrot.lane.b32.xlu1 %v2496_v14, %s2799_s27 }
  0x7b   : > { %680 = vrot.lane.b32.xlu0 %v3053_v55, %s2800_s28 }
  0x7c   : > { %678 = vrot.lane.b32.xlu1 %v3058_v57, %s2800_s28 }
  0x7f   : > { %749 = vrot.lane.b32.xlu0 %v2532_v1, %s2801_s29 }
  0x80   : > { %682 = vrot.lane.b32.xlu1 %v2504_v16, %s2800_s28  ;;  %s2807_s28 = smov 56  }
  0x83   : > { %753 = vrot.lane.b32.xlu0 %v2488_v10, %s2801_s29 }
  0x84   : > { %751 = vrot.lane.b32.xlu1 %v2487_v7, %s2801_s29 }
  0x87   : > { %822 = vrot.lane.b32.xlu0 %v2540_v8, %s2802_s14 }
  0x88   : > { %755 = vrot.lane.b32.xlu1 %v2512_v18, %s2801_s29 }
  0x8b   : > { %826 = vrot.lane.b32.xlu0 %v2496_v14, %s2802_s14  ;;  %v523_v22 = vpop.permute.xlu0 %522 }
  0x8c   : > { %824 = vrot.lane.b32.xlu1 %v2495_v12, %s2802_s14  ;;  %547 = vst.msk [vmem:[#allocation3] sm:$0xf] %vm546_vm5, %v523_v22 }
  0x8f   : > { %896 = vrot.lane.b32.xlu0 %v3058_v57, %s2803_s16 }
  0x90   : > { %828 = vrot.lane.b32.xlu1 %v2520_v20, %s2802_s14  ;;  %s2808_s14 = smov 40  }
  0x93   : > { %900 = vrot.lane.b32.xlu0 %v2504_v16, %s2803_s16 }
  0x94   : > { %898 = vrot.lane.b32.xlu1 %v3053_v55, %s2803_s16  ;;  %v596_v24 = vpop.permute.xlu0 %595 }
  0x95   : > { %620 = vst.msk [vmem:[#allocation3] sm:$0xf] %vm619_vm6, %v596_v24 }
  0x97   : > { %969 = vrot.lane.b32.xlu0 %v2487_v7, %s2804_s17 }
  0x98   : > { %902 = vrot.lane.b32.xlu1 %v2528_v23, %s2803_s16 }
  0x9b   : > { %973 = vrot.lane.b32.xlu0 %v2512_v18, %s2804_s17 }
  0x9c   : > { %971 = vrot.lane.b32.xlu1 %v2488_v10, %s2804_s17 }
  0x9e   : > { %v527_v27 = vpop.permute.xlu1 %526 }
  0x9f   : > { %549 = vst.msk [vmem:[#allocation3 + $0x8] sm:$0xf] %vm546_vm5, %v527_v27  ;;  %1042 = vrot.lane.b32.xlu0 %v2495_v12, %s2805_s25 }
  0xa0   : > { %975 = vrot.lane.b32.xlu1 %v2536_v26, %s2804_s17 }
  0xa1   : > { %v525_v28 = vpop.permute.xlu0 %524 }
  0xa2   : > { %v529_v30 = vpop.permute.xlu1 %528  ;;  %548 = vst.msk [vmem:[#allocation3 + $0x4] sm:$0xf] %vm546_vm5, %v525_v28 }
  0xa3   : > { %550 = vst.msk [vmem:[#allocation3 + $0xc] sm:$0xf] %vm546_vm5, %v529_v30  ;;  %1046 = vrot.lane.b32.xlu0 %v2520_v20, %s2805_s25 }
  0xa4   : > { %1044 = vrot.lane.b32.xlu1 %v2496_v14, %s2805_s25 }
  0xa5   : > { %v600_v32 = vpop.permute.xlu0 %599 }
  0xa6   : > { %v598_v33 = vpop.permute.xlu1 %597  ;;  %622 = vst.msk [vmem:[#allocation3 + $0x8] sm:$0xf] %vm619_vm6, %v600_v32  ;;  %v1752_v32 = vld [vmem:[#allocation4 + $0x90] sm:$0xff] }
  0xa7   : > { %621 = vst.msk [vmem:[#allocation3 + $0x4] sm:$0xf] %vm619_vm6, %v598_v33  ;;  %v1379_v33 = vld [vmem:[#allocation4 + $0x1] sm:$0xff] }
  0xa8   : > { %1048 = vrot.lane.b32.xlu1 %v2544_v31, %s2805_s25 }
  0xa9   : > { %v669_v34 = vpop.permute.xlu0 %668 }
  0xaa   : > { %v602_v35 = vpop.permute.xlu1 %601  ;;  %693 = vst.msk [vmem:[#allocation3] sm:$0xf] %vm692_vm7, %v669_v34  ;;  %v1825_v34 = vld [vmem:[#allocation4 + $0x91] sm:$0xff] }
  0xab   : > { %623 = vst.msk [vmem:[#allocation3 + $0xc] sm:$0xf] %vm619_vm6, %v602_v35  ;;  %v2592_v35 = vpack.c.bf16 %v1752_v32, %v1752_v32 }
  0xad   : > { %v673_v36 = vpop.permute.xlu0 %672  ;;  %1799 = vrot.lane.b32.xlu1 %v2592_v35, %s2806_s26 }
  0xae   : > { %v671_v37 = vpop.permute.xlu1 %670  ;;  %695 = vst.msk [vmem:[#allocation3 + $0x8] sm:$0xf] %vm692_vm7, %v673_v36  ;;  %v2545_v36 = vpack.c.bf16 %v1379_v33, %v1379_v33 }
  0xaf   : > { %694 = vst.msk [vmem:[#allocation3 + $0x4] sm:$0xf] %vm692_vm7, %v671_v37  ;;  %v1452_v37 = vld [vmem:[#allocation4 + $0x2] sm:$0xff] }
  0xb0   : > { %1419 = vrot.lane.b32.xlu0 %v2545_v36, %s2799_s27 }
  0xb1   : > { %v742_v38 = vpop.permute.xlu0 %741 }
  0xb2   : > { %v675_v39 = vpop.permute.xlu1 %674  ;;  %766 = vst.msk [vmem:[#allocation3] sm:$0xf] %vm765_vm8, %v742_v38  ;;  %v2600_v38 = vpack.c.bf16 %v1825_v34, %v1825_v34 }
  0xb3   : > { %696 = vst.msk [vmem:[#allocation3 + $0xc] sm:$0xf] %vm692_vm7, %v675_v39  ;;  %v2553_v39 = vpack.c.bf16 %v1452_v37, %v1452_v37 }
  0xb4   : > { %1872 = vrot.lane.b32.xlu1 %v2600_v38, %s2807_s28 }
  0xb5   : > { %v746_v40 = vpop.permute.xlu0 %745  ;;  %1492 = vrot.lane.b32.xlu0 %v2553_v39, %s2801_s29  ;;  %v1260_v39 = vlaneseq }
  0xb6   : > { %v744_v41 = vpop.permute.xlu1 %743  ;;  %768 = vst.msk [vmem:[#allocation3 + $0x8] sm:$0xf] %vm765_vm8, %v746_v40 }
  0xb7   : > { %767 = vst.msk [vmem:[#allocation3 + $0x4] sm:$0xf] %vm765_vm8, %v744_v41 }
  0xb9   : > { %v815_v42 = vpop.permute.xlu0 %814 }
  0xba   : > { %v748_v43 = vpop.permute.xlu1 %747  ;;  %839 = vst.msk [vmem:[#allocation3] sm:$0xf] %vm838_vm9, %v815_v42 }
  0xbb   : > { %769 = vst.msk [vmem:[#allocation3 + $0xc] sm:$0xf] %vm765_vm8, %v748_v43 }
  0xbd   : > { %v819_v44 = vpop.permute.xlu0 %818 }
  0xbe   : > { %v817_v45 = vpop.permute.xlu1 %816  ;;  %841 = vst.msk [vmem:[#allocation3 + $0x8] sm:$0xf] %vm838_vm9, %v819_v44 }
  0xbf   : > { %840 = vst.msk [vmem:[#allocation3 + $0x4] sm:$0xf] %vm838_vm9, %v817_v45 }
  0xc1   : > { %v889_v46 = vpop.permute.xlu0 %888 }
  0xc2   : > { %v821_v47 = vpop.permute.xlu1 %820  ;;  %913 = vst.msk [vmem:[#allocation3] sm:$0xf] %vm912_vm10, %v889_v46 }
  0xc3   : > { %842 = vst.msk [vmem:[#allocation3 + $0xc] sm:$0xf] %vm838_vm9, %v821_v47 }
  0xc5   : > { %v893_v48 = vpop.permute.xlu0 %892 }
  0xc6   : > { %v891_v49 = vpop.permute.xlu1 %890  ;;  %915 = vst.msk [vmem:[#allocation3 + $0x8] sm:$0xf] %vm912_vm10, %v893_v48 }
  0xc7   : > { %914 = vst.msk [vmem:[#allocation3 + $0x4] sm:$0xf] %vm912_vm10, %v891_v49 }
  0xc9   : > { %v962_v50 = vpop.permute.xlu0 %961 }
  0xca   : > { %v895_v51 = vpop.permute.xlu1 %894  ;;  %986 = vst.msk [vmem:[#allocation3] sm:$0xf] %vm985_vm11, %v962_v50 }
  0xcb   : > { %916 = vst.msk [vmem:[#allocation3 + $0xc] sm:$0xf] %vm912_vm10, %v895_v51 }
  0xcd   : > { %v966_v52 = vpop.permute.xlu0 %965 }
  0xce   : > { %v964_v53 = vpop.permute.xlu1 %963  ;;  %988 = vst.msk [vmem:[#allocation3 + $0x8] sm:$0xf] %vm985_vm11, %v966_v52 }
  0xcf   : > { %987 = vst.msk [vmem:[#allocation3 + $0x4] sm:$0xf] %vm985_vm11, %v964_v53 }
  0xd1   : > { %v1035_v54 = vpop.permute.xlu0 %1034 }
  0xd2   : > { %v968_v55 = vpop.permute.xlu1 %967  ;;  %1059 = vst.msk [vmem:[#allocation3] sm:$0xf] %vm1058_vm12, %v1035_v54 }
  0xd3   : > { %989 = vst.msk [vmem:[#allocation3 + $0xc] sm:$0xf] %vm985_vm11, %v968_v55 }
  0xd5   : > { %v531_v56 = vpop.permute.xlu0 %530 }
  0xd6   : > { %v1037_v57 = vpop.permute.xlu1 %1036  ;;  %551 = vst.msk [vmem:[#allocation3 + $0x10] sm:$0xf] %vm546_vm5, %v531_v56 }
  0xd7   : > { %1060 = vst.msk [vmem:[#allocation3 + $0x4] sm:$0xf] %vm1058_vm12, %v1037_v57 }
  0xd9   : > { %v1039_v58 = vpop.permute.xlu0 %1038 }
  0xda   : > { %v533_v59 = vpop.permute.xlu1 %532  ;;  %1061 = vst.msk [vmem:[#allocation3 + $0x8] sm:$0xf] %vm1058_vm12, %v1039_v58 }
  0xdb   : > { %552 = vst.msk [vmem:[#allocation3 + $0x14] sm:$0xf] %vm546_vm5, %v533_v59 }
  0xdd   : > { %v535_v60 = vpop.permute.xlu0 %534 }
  0xde   : > { %v1041_v61 = vpop.permute.xlu1 %1040  ;;  %v2715_v62 = vld [vmem:[#allocation3] sm:$0xff]   ;;  %553 = vst.msk [vmem:[#allocation3 + $0x18] sm:$0xf] %vm546_vm5, %v535_v60 }
  0xdf   : > { %1062 = vst.msk [vmem:[#allocation3 + $0xc] sm:$0xf] %vm1058_vm12, %v1041_v61  ;;  %2632 = vmatprep.mubr.msk.bf16.mxu0 %vm1115_vm13, %v2715_v62 }
  0xe1   : > { %v604_v63 = vpop.permute.xlu0 %603 }
  0xe2   : > { %v537_v1 = vpop.permute.xlu1 %536  ;;  %624 = vst.msk [vmem:[#allocation3 + $0x10] sm:$0xf] %vm619_vm6, %v604_v63 }
  0xe3   : > { %554 = vst.msk [vmem:[#allocation3 + $0x1c] sm:$0xf] %vm546_vm5, %v537_v1 }
  0xe5   : > { %v608_v2 = vpop.permute.xlu0 %607 }
  0xe6   : > { %v606_v3 = vpop.permute.xlu1 %605  ;;  %v2717_v4 = vld [vmem:[#allocation3 + $0x8] sm:$0xff]   ;;  %626 = vst.msk [vmem:[#allocation3 + $0x18] sm:$0xf] %vm619_vm6, %v608_v2 }
  0xe7   : > { %625 = vst.msk [vmem:[#allocation3 + $0x14] sm:$0xf] %vm619_vm6, %v606_v3  ;;  %2633 = vmatmul.mubr.msk.bf16.vlgmr.msra.gmra.mrb[0].mxu0 %vm1115_vm13, %v2717_v4 }
  0xe9   : > { %v677_v5 = vpop.permute.xlu0 %676 }
  0xea   : > { %v610_v6 = vpop.permute.xlu1 %609  ;;  %697 = vst.msk [vmem:[#allocation3 + $0x10] sm:$0xf] %vm692_vm7, %v677_v5 }
  0xeb   : > { %627 = vst.msk [vmem:[#allocation3 + $0x1c] sm:$0xf] %vm619_vm6, %v610_v6 }
  0xed   : > { %v681_v7 = vpop.permute.xlu0 %680 }
  0xee   : > { %v679_v8 = vpop.permute.xlu1 %678  ;;  %699 = vst.msk [vmem:[#allocation3 + $0x18] sm:$0xf] %vm692_vm7, %v681_v7 }
  0xef   : > { %698 = vst.msk [vmem:[#allocation3 + $0x14] sm:$0xf] %vm692_vm7, %v679_v8 }
  0xf1   : > { %v750_v9 = vpop.permute.xlu0 %749 }
  0xf2   : > { %v683_v10 = vpop.permute.xlu1 %682  ;;  %770 = vst.msk [vmem:[#allocation3 + $0x10] sm:$0xf] %vm765_vm8, %v750_v9 }
  0xf3   : > { %700 = vst.msk [vmem:[#allocation3 + $0x1c] sm:$0xf] %vm692_vm7, %v683_v10 }
  0xf5   : > { %v754_v11 = vpop.permute.xlu0 %753 }
  0xf6   : > { %v752_v12 = vpop.permute.xlu1 %751  ;;  %772 = vst.msk [vmem:[#allocation3 + $0x18] sm:$0xf] %vm765_vm8, %v754_v11 }
  0xf7   : > { %771 = vst.msk [vmem:[#allocation3 + $0x14] sm:$0xf] %vm765_vm8, %v752_v12 }
  0xf9   : > { %v823_v13 = vpop.permute.xlu0 %822 }
  0xfa   : > { %v756_v14 = vpop.permute.xlu1 %755  ;;  %843 = vst.msk [vmem:[#allocation3 + $0x10] sm:$0xf] %vm838_vm9, %v823_v13 }
  0xfb   : > { %773 = vst.msk [vmem:[#allocation3 + $0x1c] sm:$0xf] %vm765_vm8, %v756_v14 }
  0xfd   : > { %v827_v15 = vpop.permute.xlu0 %826 }
  0xfe   : > { %v825_v16 = vpop.permute.xlu1 %824  ;;  %845 = vst.msk [vmem:[#allocation3 + $0x18] sm:$0xf] %vm838_vm9, %v827_v15 }
  0xff   : > { %844 = vst.msk [vmem:[#allocation3 + $0x14] sm:$0xf] %vm838_vm9, %v825_v16 }
 0x101   : > { %v897_v17 = vpop.permute.xlu0 %896 }
 0x102   : > { %v829_v18 = vpop.permute.xlu1 %828  ;;  %917 = vst.msk [vmem:[#allocation3 + $0x10] sm:$0xf] %vm912_vm10, %v897_v17 }
 0x103   : > { %846 = vst.msk [vmem:[#allocation3 + $0x1c] sm:$0xf] %vm838_vm9, %v829_v18 }
 0x105   : > { %v901_v19 = vpop.permute.xlu0 %900 }
 0x106   : > { %v899_v20 = vpop.permute.xlu1 %898  ;;  %919 = vst.msk [vmem:[#allocation3 + $0x18] sm:$0xf] %vm912_vm10, %v901_v19 }
 0x107   : > { %918 = vst.msk [vmem:[#allocation3 + $0x14] sm:$0xf] %vm912_vm10, %v899_v20 }
 0x109   : > { %v970_v21 = vpop.permute.xlu0 %969 }
 0x10a   : > { %v903_v22 = vpop.permute.xlu1 %902  ;;  %990 = vst.msk [vmem:[#allocation3 + $0x10] sm:$0xf] %vm985_vm11, %v970_v21 }
 0x10b   : > { %920 = vst.msk [vmem:[#allocation3 + $0x1c] sm:$0xf] %vm912_vm10, %v903_v22 }
 0x10d   : > { %v974_v23 = vpop.permute.xlu0 %973 }
 0x10e   : > { %v972_v24 = vpop.permute.xlu1 %971  ;;  %992 = vst.msk [vmem:[#allocation3 + $0x18] sm:$0xf] %vm985_vm11, %v974_v23 }
 0x10f   : > { %991 = vst.msk [vmem:[#allocation3 + $0x14] sm:$0xf] %vm985_vm11, %v972_v24 }
 0x111   : > { %v1043_v25 = vpop.permute.xlu0 %1042 }
 0x112   : > { %v976_v26 = vpop.permute.xlu1 %975  ;;  %1063 = vst.msk [vmem:[#allocation3 + $0x10] sm:$0xf] %vm1058_vm12, %v1043_v25 }
 0x113   : > { %993 = vst.msk [vmem:[#allocation3 + $0x1c] sm:$0xf] %vm985_vm11, %v976_v26 }
 0x115   : > { %v1047_v27 = vpop.permute.xlu0 %1046 }
 0x116   : > { %v1045_v28 = vpop.permute.xlu1 %1044  ;;  %1065 = vst.msk [vmem:[#allocation3 + $0x18] sm:$0xf] %vm1058_vm12, %v1047_v27 }
 0x117   : > { %1064 = vst.msk [vmem:[#allocation3 + $0x14] sm:$0xf] %vm1058_vm12, %v1045_v28 }
 0x11a   : > { %v1049_v29 = vpop.permute.xlu1 %1048 }
 0x11b   : > { %1066 = vst.msk [vmem:[#allocation3 + $0x1c] sm:$0xf] %vm1058_vm12, %v1049_v29  ;;  %vm2041_vm12 = vcmask 1043456  }
 0x11e   : > { %v2718_v30 = vld [vmem:[#allocation3 + $0x10] sm:$0xff]  }
 0x11f   : > { %2636 = vmatprep.mubr.msk.bf16.mxu0 %vm1115_vm13, %v2718_v30 }
 0x122   : > { %v2719_v31 = vld [vmem:[#allocation3 + $0x18] sm:$0xff]  }
 0x123   : > { %2637 = vmatmul.mubr.msk.bf16.gmra.mrb[4].mxu0 %vm1115_vm13, %v2719_v31  ;;  %vm1589_vm13 = vcmask 257216  }
 0x1ba   : > { %v3258_v40 = vpop.f32.mrb[0].mxu0 }
 0x1bb   : > { %v3260_v0 = vpop.f32.mrb[1].mxu0  ;;  %v1221_v44 = vmul.f32 %v3258_v40, %v3258_v40  ;;  %v1201_v49 = vsel %vm1197_vm14, %v3258_v40, 0.0 }
 0x1bc   : > { %v1219_v41 = vmul.f32 %v3260_v0, %v3260_v0  ;;  %v3264_v42 = vpop.f32.mrb[2].mxu0  ;;  %v1198_v45 = vsel %vm1197_vm14, %v3260_v0, 0.0 }
 0x1bd   : > { %v3266_v43 = vpop.f32.mrb[3].mxu0  ;;  %v1222_v51 = vmul.f32 %v3264_v42, %v3264_v42  ;;  %v1230_v55 = vsel %vm1197_vm14, %v1221_v44, 0.0  ;;  %v1203_v56 = vsel %vm1197_vm14, %v3264_v42, 0.0  ;;  %v1252_v44 = vld [vmem:[%s3613_s2] sm:$0x1] }
 0x1be   : > { %v1199_v46 = vsel %vm1197_vm14, %v3266_v43, 0.0  ;;  %v1220_v47 = vmul.f32 %v3266_v43, %v3266_v43  ;;  %v1227_v50 = vsel %vm1197_vm14, %v1219_v41, 0.0  ;;  %v1261_v41 = vshrl.u32 %v1260_v39, 7 }
 0x1bf   : > { %v1200_v48 = vadd.f32 %v1199_v46, %v1198_v45  ;;  %v1232_v59 = vsel %vm1197_vm14, %v1222_v51, 0.0 }
 0x1c0   : > { %v1228_v52 = vsel %vm1197_vm14, %v1220_v47, 0.0  ;;  %v3302_v45 = vsub.s32 0, %v1261_v41 }
 0x1c1   : > { %v1202_v53 = vadd.f32 %v1201_v49, %v1200_v48  ;;  %v1229_v54 = vadd.f32 %v1228_v52, %v1227_v50  ;;  %v1354_v48 = vld [vmem:[#allocation4] sm:$0xff] }
 0x1c2   : > { %v1256_v49 = vld [vmem:[%s3614_s3] sm:$0x1]  ;;  %v1362_v50 = vpack.c.bf16 %v1354_v48, %v1354_v48 }
 0x1c3   : > { %v1231_v57 = vadd.f32 %v1230_v55, %v1229_v54  ;;  %v1204_v58 = vadd.f32 %v1203_v56, %v1202_v53  ;;  %v1420_v53 = vpop.permute.xlu0 %1419 }
 0x1c4   : > { %1371 = vst.msk [vmem:[#allocation5] sm:$0xf] %vm1370_vm2, %v1362_v50 }
 0x1c5   : > { %v1233_v60 = vadd.f32 %v1232_v59, %v1231_v57  ;;  %1444 = vst.msk [vmem:[#allocation5] sm:$0xf] %vm1443_vm1, %v1420_v53 }
 0x1f6   : > { %v3286_v61 = vpop.f32.mrb[4].mxu0 }
 0x1f7   : > { %v1182_v62 = vpop.f32.mrb[5].mxu0  ;;  %v1225_v5 = vmul.f32 %v3286_v61, %v3286_v61  ;;  %v1209_v11 = vsel %vm1197_vm14, %v3286_v61, 0.0 }
 0x1f8   : > { %v1205_v63 = vsel %vm1197_vm14, %v1182_v62, 0.0  ;;  %v1223_v1 = vmul.f32 %v1182_v62, %v1182_v62  ;;  %v2639_v2 = vpop.f32.mrb[6].mxu0 }
 0x1f9   : > { %v1206_v3 = vadd.f32 %v1205_v63, %v1204_v58  ;;  %v1185_v4 = vpop.f32.mrb[7].mxu0  ;;  %v1226_v12 = vmul.f32 %v2639_v2, %v2639_v2  ;;  %v1238_v16 = vsel %vm1197_vm14, %v1225_v5, 0.0  ;;  %v1211_v17 = vsel %vm1197_vm14, %v2639_v2, 0.0  ;;  %v1493_v5 = vpop.permute.xlu0 %1492 }
 0x1fa   : > { %v1234_v6 = vsel %vm1197_vm14, %v1223_v1, 0.0  ;;  %v1207_v7 = vsel %vm1197_vm14, %v1185_v4, 0.0  ;;  %v1224_v8 = vmul.f32 %v1185_v4, %v1185_v4  ;;  %1517 = vst.msk [vmem:[#allocation5] sm:$0xf] %vm1516_vm3, %v1493_v5 }
 0x1fb   : > { %v1235_v9 = vadd.f32 %v1234_v6, %v1233_v60  ;;  %v1208_v10 = vadd.f32 %v1207_v7, %v1206_v3  ;;  %v1240_v20 = vsel %vm1197_vm14, %v1226_v12, 0.0 }
 0x1fc   : > { %v1236_v13 = vsel %vm1197_vm14, %v1224_v8, 0.0 }
 0x1fd   : > { %v1210_v14 = vadd.f32 %v1209_v11, %v1208_v10  ;;  %v1237_v15 = vadd.f32 %v1236_v13, %v1235_v9 }
 0x1ff   : > { %v1212_v18 = vadd.f32 %v1211_v17, %v1210_v14  ;;  %v1239_v19 = vadd.f32 %v1238_v16, %v1237_v15 }
 0x201   : > { %v1213_v21 = vrot.slane %v1212_v18, 4  ;;  %v1241_v22 = vadd.f32 %v1240_v20, %v1239_v19 }
 0x203   : > { %v1214_v23 = vadd.f32 %v1213_v21, %v1212_v18  ;;  %v1242_v24 = vrot.slane %v1241_v22, 4 }
 0x205   : > { %v1215_v25 = vrot.slane %v1214_v23, 2  ;;  %v1243_v26 = vadd.f32 %v1242_v24, %v1241_v22 }
 0x207   : > { %v1216_v27 = vadd.f32 %v1215_v25, %v1214_v23  ;;  %v1244_v28 = vrot.slane %v1243_v26, 2 }
 0x209   : > { %v1217_v29 = vrot.slane %v1216_v27, 1  ;;  %v1245_v30 = vadd.f32 %v1244_v28, %v1243_v26 }
 0x20b   : > { %v1218_v31 = vadd.f32 %v1217_v29, %v1216_v27  ;;  %v1246_v32 = vrot.slane %v1245_v30, 1 }
 0x20d   : > { %v1247_v33 = vadd.f32 %v1246_v32, %v1245_v30  ;;  %v1248_v34 = vmul.f32 0.015625, %v1218_v31 }
 0x20f   : > { %v1249_v35 = vmul.f32 0.015625, %v1247_v33  ;;  %v1250_v36 = vmul.f32 %v1248_v34, %v1248_v34 }
 0x211   : > { %v1251_v37 = vsub.f32 %v1249_v35, %v1250_v36 }
 0x213   : > { %v1253_v38 = vadd.f32 1e-05, %v1251_v37 }
 0x215   : > { %2729 = vrsqrt.f32 %v1253_v38 }
 0x21f   : > { %v2730_v46 = vpop.eup %2729 }
 0x220   : > { %v1255_v47 = vmul.f32 %v2730_v46, %v1252_v44 }
 0x222   : > { %v1257_v51 = vmul.f32 %v1255_v47, %v1248_v34  ;;  %v1263_v52 = vrot.slane %v1255_v47, %v3302_v45 }
 0x224   : > { %v1258_v54 = vsub.f32 %v1256_v49, %v1257_v51  ;;  %v1265_v55 = vmul.f32 %v1263_v52, %v3260_v0  ;;  %v1266_v56 = vmul.f32 %v1263_v52, %v3266_v43  ;;  %v1267_v57 = vmul.f32 %v3258_v40, %v1263_v52  ;;  %v2396_v0 = vld [vmem:[%s3615_s4] ss:$0 sm:$0xff] }
 0x225   : > { %v1268_v58 = vmul.f32 %v3264_v42, %v1263_v52  ;;  %v1269_v59 = vmul.f32 %v1263_v52, %v1182_v62  ;;  %v1270_v60 = vmul.f32 %v1263_v52, %v1185_v4  ;;  %v1271_v63 = vmul.f32 %v3286_v61, %v1263_v52 }
 0x226   : > { %v1272_v1 = vmul.f32 %v2639_v2, %v1263_v52  ;;  %v1277_v3 = vrot.slane %v1258_v54, %v3302_v45 }
 0x228   : > { %v1279_v43 = vadd.f32 %v1277_v3, %v1265_v55  ;;  %v1280_v6 = vadd.f32 %v1277_v3, %v1266_v56  ;;  %v1281_v40 = vadd.f32 %v1277_v3, %v1267_v57  ;;  %v1282_v7 = vadd.f32 %v1277_v3, %v1268_v58  ;;  %v2720_v57 = vld [vmem:[%s3616_s5] sm:$0xff]   ;;  %v2721_v58 = vld [vmem:[%s3616_s5 + $0x8] sm:$0xff]  }
 0x229   : > { %v1283_v42 = vadd.f32 %v1277_v3, %v1269_v59  ;;  %v1284_v62 = vadd.f32 %v1277_v3, %v1270_v60  ;;  %v1285_v4 = vadd.f32 %v1277_v3, %v1271_v63  ;;  %v1286_v8 = vadd.f32 %v1277_v3, %v1272_v1  ;;  %2640 = vmatprep.subr.bf16.mxu1 %v2720_v57  ;;  %v2722_v60 = vld [vmem:[%s3616_s5 + $0x10] sm:$0xff]   ;;  %v2723_v1 = vld [vmem:[%s3616_s5 + $0x18] sm:$0xff]  }
 0x22a   : > { %v1302_v61 = vmul.f32 %v2396_v0, %v1279_v43  ;;  %v1303_v2 = vmul.f32 %v2396_v0, %v1280_v6  ;;  %v1304_v9 = vmul.f32 %v2396_v0, %v1281_v40  ;;  %v1305_v10 = vmul.f32 %v2396_v0, %v1282_v7  ;;  %2641 = vmatpush3.bf16.msra.mxu1 %v2720_v57 }
 0x22b   : > { %vm1292_vm4 = vcmp.gt.f32.partialorder %v1284_v62, 0.0  ;;  %v1306_v11 = vmul.f32 %v2396_v0, %v1283_v42  ;;  %v1307_v12 = vmul.f32 %v2396_v0, %v1284_v62  ;;  %v1308_v13 = vmul.f32 %v2396_v0, %v1285_v4  ;;  %2642 = vmatprep.subr.bf16.mxu1 %v2721_v58 }
 0x22c   : > { %v1309_v14 = vmul.f32 %v2396_v0, %v1286_v8  ;;  %vm1288_vm5 = vcmp.gt.f32.partialorder %v1280_v6, 0.0  ;;  %vm1287_vm6 = vcmp.gt.f32.partialorder %v1279_v43, 0.0  ;;  %vm1289_vm7 = vcmp.gt.f32.partialorder %v1281_v40, 0.0  ;;  %v2725_v0 = vld [vmem:[%s3616_s5 + $0x20] ss:$0 sps:$4 sm:$0xff]  }
 0x22d   : > { %v1315_v15 = vsel %vm1292_vm4, %v1284_v62, %v1307_v12  ;;  %v1311_v16 = vsel %vm1288_vm5, %v1280_v6, %v1303_v2  ;;  %v1310_v17 = vsel %vm1287_vm6, %v1279_v43, %v1302_v61  ;;  %v1312_v18 = vsel %vm1289_vm7, %v1281_v40, %v1304_v9 }
 0x22e   : > { %1351 = vst.msk [vmem:[#allocation4 + $0x61] sm:$0xff] %vm1197_vm14, %v1315_v15  ;;  %1347 = vst.msk [vmem:[#allocation4 + $0x21] sm:$0xff] %vm1197_vm14, %v1311_v16  ;;  %vm1290_vm8 = vcmp.gt.f32.partialorder %v1282_v7, 0.0  ;;  %vm1291_vm9 = vcmp.gt.f32.partialorder %v1283_v42, 0.0  ;;  %vm1293_vm10 = vcmp.gt.f32.partialorder %v1285_v4, 0.0  ;;  %vm1294_vm11 = vcmp.gt.f32.partialorder %v1286_v8, 0.0  ;;  %2643 = vmatpush3.bf16.msra.mxu1 %v2721_v58 }
 0x22f   : > { %1346 = vst.msk [vmem:[#allocation4 + $0x11] sm:$0xff] %vm1197_vm14, %v1310_v17  ;;  %1348 = vst.msk [vmem:[#allocation4 + $0x31] sm:$0xff] %vm1197_vm14, %v1312_v18  ;;  %v1313_v19 = vsel %vm1290_vm8, %v1282_v7, %v1305_v10  ;;  %v1314_v20 = vsel %vm1291_vm9, %v1283_v42, %v1306_v11  ;;  %v1316_v21 = vsel %vm1293_vm10, %v1285_v4, %v1308_v13  ;;  %2644 = vmatprep.subr.bf16.mxu1 %v2722_v60  ;;  %v1898_v16 = vld [vmem:[#allocation4 + $0x92] sm:$0xff]  ;;  %vm1882_vm4 = vcmask 519616  }
 0x230   : > { %v1317_v22 = vsel %vm1294_vm11, %v1286_v8, %v1309_v14  ;;  %1349 = vst.msk [vmem:[#allocation4 + $0x41] sm:$0xff] %vm1197_vm14, %v1313_v19  ;;  %1350 = vst.msk [vmem:[#allocation4 + $0x51] sm:$0xff] %vm1197_vm14, %v1314_v20  ;;  %v2043_v5 = vsel %vm2041_vm12, %v2725_v0, 0  ;;  %v3416_v14 = vpop.permute.xlu1 %1799  ;;  %v2608_v17 = vpack.c.bf16 %v1898_v16, %v1898_v16  ;;  %vm1955_vm5 = vcmask 585216  }
 0x231   : > { %1352 = vst.msk [vmem:[#allocation4 + $0x71] sm:$0xff] %vm1197_vm14, %v1316_v21  ;;  %1353 = vst.msk [vmem:[#allocation4 + $0x81] sm:$0xff] %vm1197_vm14, %v1317_v22  ;;  %vm2028_vm6 = vcmask 588800  }
 0x232   : > { %2645 = vmatpush3.bf16.msra.mxu1 %v2722_v60 }
 0x233   : > { %2646 = vmatprep.subr.bf16.mxu1 %v2723_v1 }
 0x234   : > { %v3423_v15 = vpop.permute.xlu1 %1872 }
 0x235   : > { %v1381_v23 = vld [vmem:[#allocation4 + $0x21] sm:$0xff] }
 0x236   : > { %v1380_v24 = vld [vmem:[#allocation4 + $0x11] sm:$0xff]  ;;  %v2547_v25 = vpack.c.bf16 %v1381_v23, %v1381_v23  ;;  %v1454_v27 = vld [vmem:[#allocation4 + $0x22] sm:$0xff]  ;;  %2647 = vmatpush3.bf16.msra.mxu1 %v2723_v1 }
 0x237   : > { %v2546_v26 = vpack.c.bf16 %v1380_v24, %v1380_v24  ;;  %v1525_v28 = vld [vmem:[#allocation4 + $0x10] sm:$0xff]  ;;  %v1526_v32 = vld [vmem:[#allocation4 + $0x20] sm:$0xff]  ;;  %v2555_v38 = vpack.c.bf16 %v1454_v27, %v1454_v27  ;;  %2659 = vmatprep.subr.msk.bf16.mxu1 %vm2041_vm12, %v2725_v0 }
 0x238   : > { %v1382_v29 = vld [vmem:[#allocation4 + $0x31] sm:$0xff]  ;;  %v2561_v30 = vpack.c.bf16 %v1525_v28, %v1525_v28  ;;  %1423 = vrot.lane.b32.xlu0 %v2547_v25, %s2799_s27  ;;  %v2562_v34 = vpack.c.bf16 %v1526_v32, %v1526_v32  ;;  %v1528_v35 = vld [vmem:[#allocation4 + $0x40] sm:$0xff] }
 0x239   : > { %v1527_v31 = vld [vmem:[#allocation4 + $0x30] sm:$0xff]  ;;  %1421 = vrot.lane.b32.xlu1 %v2546_v26, %s2799_s27  ;;  %v2564_v36 = vpack.c.bf16 %v1528_v35, %v1528_v35  ;;  %v2548_v39 = vpack.c.bf16 %v1382_v29, %v1382_v29  ;;  %v1530_v47 = vld [vmem:[#allocation4 + $0x60] sm:$0xff] }
 0x23a   : > { %v2563_v33 = vpack.c.bf16 %v1527_v31, %v1527_v31  ;;  %v1748_v37 = vld [vmem:[#allocation4 + $0x50] sm:$0xff]  ;;  %1372 = vst.msk [vmem:[#allocation5 + $0x4] sm:$0xf] %vm1370_vm2, %v2561_v30  ;;  %1373 = vst.msk [vmem:[#allocation5 + $0x8] sm:$0xf] %vm1370_vm2, %v2562_v34  ;;  %v3340_v49 = vpack.c.bf16 %v1530_v47, %v1530_v47  ;;  %v1601_v53 = vld [vmem:[#allocation4 + $0x41] sm:$0xff]  ;;  %2649 = vmatpush3.bf16.msra.mxu1 %v2043_v5 }
 0x23b   : > { %v3331_v41 = vpack.c.bf16 %v1748_v37, %v1748_v37  ;;  %v1453_v44 = vld [vmem:[#allocation4 + $0x12] sm:$0xff]  ;;  %1375 = vst.msk [vmem:[#allocation5 + $0x10] sm:$0xf] %vm1370_vm2, %v2564_v36  ;;  %v2572_v54 = vpack.c.bf16 %v1601_v53, %v1601_v53  ;;  %v1674_v55 = vld [vmem:[#allocation4 + $0x42] sm:$0xff] }
 0x23c   : > { %1374 = vst.msk [vmem:[#allocation5 + $0xc] sm:$0xf] %vm1370_vm2, %v2563_v33  ;;  %v1531_v46 = vld [vmem:[#allocation4 + $0x70] sm:$0xff]  ;;  %1496 = vrot.lane.b32.xlu0 %v2555_v38, %s2801_s29  ;;  %v2554_v50 = vpack.c.bf16 %v1453_v44, %v1453_v44  ;;  %1377 = vst.msk [vmem:[#allocation5 + $0x18] sm:$0xf] %vm1370_vm2, %v3340_v49  ;;  %v2580_v56 = vpack.c.bf16 %v1674_v55, %v1674_v55  ;;  %v1385_v3 = vld [vmem:[#allocation4 + $0x61] sm:$0xff] }
 0x23d   : > { %1425 = vrot.lane.b32.xlu1 %v2548_v39, %s2799_s27  ;;  %v3338_v48 = vpack.c.bf16 %v1531_v46, %v1531_v46  ;;  %1376 = vst.msk [vmem:[#allocation5 + $0x14] sm:$0xf] %vm1370_vm2, %v3331_v41  ;;  %v1455_v51 = vld [vmem:[#allocation4 + $0x32] sm:$0xff]  ;;  %v2551_v43 = vpack.c.bf16 %v1385_v3, %v1385_v3  ;;  %v1458_v7 = vld [vmem:[#allocation4 + $0x62] sm:$0xff] }
 0x23e   : > { %v2556_v52 = vpack.c.bf16 %v1455_v51, %v1455_v51  ;;  %v1821_v59 = vld [vmem:[#allocation4 + $0x51] sm:$0xff]  ;;  %v2559_v62 = vpack.c.bf16 %v1458_v7, %v1458_v7  ;;  %v1532_v2 = vld [vmem:[#allocation4 + $0x80] sm:$0xff] }
 0x23f   : > { %1378 = vst.msk [vmem:[#allocation5 + $0x1c] sm:$0xf] %vm1370_vm2, %v3338_v48  ;;  %v2596_v63 = vpack.c.bf16 %v1821_v59, %v1821_v59  ;;  %v1894_v6 = vld [vmem:[#allocation4 + $0x52] sm:$0xff]  ;;  %v2568_v9 = vpack.c.bf16 %v1532_v2, %v1532_v2  ;;  %v1605_v10 = vld [vmem:[#allocation4 + $0x81] sm:$0xff]  ;;  %vm1809_vm2 = vcmask 454016  }
 0x240   : > { %1565 = vrot.lane.b32.xlu0 %v2561_v30, %s2803_s16  ;;  %v2604_v40 = vpack.c.bf16 %v1894_v6, %v1894_v6  ;;  %v1386_v42 = vld [vmem:[#allocation4 + $0x71] sm:$0xff]  ;;  %v2576_v11 = vpack.c.bf16 %v1605_v10, %v1605_v10  ;;  %v1678_v12 = vld [vmem:[#allocation4 + $0x82] sm:$0xff] }
 0x241   : > { %1494 = vrot.lane.b32.xlu1 %v2554_v50, %s2801_s29  ;;  %v2552_v4 = vpack.c.bf16 %v1386_v42, %v1386_v42  ;;  %v1459_v8 = vld [vmem:[#allocation4 + $0x72] sm:$0xff]  ;;  %v2584_v13 = vpack.c.bf16 %v1678_v12, %v1678_v12 }
 0x242   : > { %v2560_v61 = vpack.c.bf16 %v1459_v8, %v1459_v8 }
 0x244   : > { %1569 = vrot.lane.b32.xlu0 %v2563_v33, %s2803_s16 }
 0x245   : > { %1498 = vrot.lane.b32.xlu1 %v2556_v52, %s2801_s29 }
 0x248   : > { %1638 = vrot.lane.b32.xlu0 %v2546_v26, %s2805_s25 }
 0x249   : > { %1567 = vrot.lane.b32.xlu1 %v2562_v34, %s2803_s16 }
 0x24c   : > { %1642 = vrot.lane.b32.xlu0 %v2548_v39, %s2805_s25 }
 0x24d   : > { %1571 = vrot.lane.b32.xlu1 %v2564_v36, %s2803_s16 }
 0x250   : > { %1711 = vrot.lane.b32.xlu0 %v2554_v50, %s2808_s14 }
 0x251   : > { %1640 = vrot.lane.b32.xlu1 %v2547_v25, %s2805_s25 }
 0x254   : > { %1715 = vrot.lane.b32.xlu0 %v2556_v52, %s2808_s14 }
 0x255   : > { %1644 = vrot.lane.b32.xlu1 %v2572_v54, %s2805_s25 }
 0x258   : > { %1785 = vrot.lane.b32.xlu0 %v2562_v34, %s2806_s26 }
 0x259   : > { %1713 = vrot.lane.b32.xlu1 %v2555_v38, %s2808_s14 }
 0x25c   : > { %1789 = vrot.lane.b32.xlu0 %v2564_v36, %s2806_s26 }
 0x25d   : > { %1717 = vrot.lane.b32.xlu1 %v2580_v56, %s2808_s14 }
 0x260   : > { %1858 = vrot.lane.b32.xlu0 %v2547_v25, %s2807_s28 }
 0x261   : > { %1787 = vrot.lane.b32.xlu1 %v2563_v33, %s2806_s26 }
 0x264   : > { %1862 = vrot.lane.b32.xlu0 %v2572_v54, %s2807_s28 }
 0x265   : > { %1791 = vrot.lane.b32.xlu1 %v3331_v41, %s2806_s26 }
 0x268   : > { %1931 = vrot.lane.b32.xlu0 %v2555_v38, %s2809_s23 }
 0x269   : > { %1860 = vrot.lane.b32.xlu1 %v2548_v39, %s2807_s28 }
 0x26c   : > { %1427 = vrot.lane.b32.xlu0 %v2572_v54, %s2799_s27 }
 0x26d   : > { %1864 = vrot.lane.b32.xlu1 %v2596_v63, %s2807_s28 }
 0x270   : > { %1935 = vrot.lane.b32.xlu0 %v2580_v56, %s2809_s23 }
 0x271   : > { %1933 = vrot.lane.b32.xlu1 %v2556_v52, %s2809_s23 }
 0x274   : > { %1431 = vrot.lane.b32.xlu0 %v2551_v43, %s2799_s27 }
 0x275   : > { %1429 = vrot.lane.b32.xlu1 %v2596_v63, %s2799_s27 }
 0x278   : > { %1500 = vrot.lane.b32.xlu0 %v2580_v56, %s2801_s29 }
 0x279   : > { %1937 = vrot.lane.b32.xlu1 %v2604_v40, %s2809_s23 }
 0x27c   : > { %1504 = vrot.lane.b32.xlu0 %v2559_v62, %s2801_s29 }
 0x27d   : > { %1433 = vrot.lane.b32.xlu1 %v2552_v4, %s2799_s27 }
 0x280   : > { %1573 = vrot.lane.b32.xlu0 %v3331_v41, %s2803_s16 }
 0x281   : > { %1502 = vrot.lane.b32.xlu1 %v2604_v40, %s2801_s29 }
 0x284   : > { %1577 = vrot.lane.b32.xlu0 %v3338_v48, %s2803_s16 }
 0x285   : > { %1506 = vrot.lane.b32.xlu1 %v2560_v61, %s2801_s29 }
 0x288   : > { %1646 = vrot.lane.b32.xlu0 %v2596_v63, %s2805_s25 }
 0x289   : > { %1575 = vrot.lane.b32.xlu1 %v3340_v49, %s2803_s16 }
 0x28c   : > { %1650 = vrot.lane.b32.xlu0 %v2552_v4, %s2805_s25 }
 0x28d   : > { %1579 = vrot.lane.b32.xlu1 %v2568_v9, %s2803_s16 }
 0x290   : > { %1719 = vrot.lane.b32.xlu0 %v2604_v40, %s2808_s14 }
 0x291   : > { %1648 = vrot.lane.b32.xlu1 %v2551_v43, %s2805_s25 }
 0x294   : > { %1723 = vrot.lane.b32.xlu0 %v2560_v61, %s2808_s14 }
 0x295   : > { %1652 = vrot.lane.b32.xlu1 %v2576_v11, %s2805_s25  ;;  %s3555_s25 = scalar_lea.hbm %s3620_s9, %s2609_s21 }
 0x298   : > { %1793 = vrot.lane.b32.xlu0 %v3340_v49, %s2806_s26 }
 0x299   : > { %1721 = vrot.lane.b32.xlu1 %v2559_v62, %s2808_s14 }
 0x29c   : > { %1797 = vrot.lane.b32.xlu0 %v2568_v9, %s2806_s26 }
 0x29d   : > { %1725 = vrot.lane.b32.xlu1 %v2584_v13, %s2808_s14 }
 0x2a0   : > { %1866 = vrot.lane.b32.xlu0 %v2551_v43, %s2807_s28 }
 0x2a1   : > { %1795 = vrot.lane.b32.xlu1 %v3338_v48, %s2806_s26 }
 0x2a4   : > { %1870 = vrot.lane.b32.xlu0 %v2576_v11, %s2807_s28 }
 0x2a5   : > { %1868 = vrot.lane.b32.xlu1 %v2552_v4, %s2807_s28  ;;  %s323_s28 = sand.u32 1, %s2787_s10  }
 0x2a6   : > { %s2318_s14 = sshll.u32 %s323_s28, 6  ;;  %s3569_s13 = scalar_lea.sflag [#allocation7], %s323_s28 }
 0x2a7   : > { %s325_s22 = scalar_lea.vmem [#allocation6], %s2318_s14  ;;  %s2810_s14 = smov [#allocation6]  }
 0x2a8   : > { %1939 = vrot.lane.b32.xlu0 %v2559_v62, %s2809_s23  ;;  %s2252_s17 = sshll.u32 %s325_s22, 4  ;;  %s3558_s17 = int_to_ptr.vmem [resolvable:$true] %s2252_s17 }
 0x2a9   : > { %1941 = vrot.lane.b32.xlu1 %v2560_v61, %s2809_s23  ;;  %s2733_s26 = scalar_lea.vmem %s3558_s17, 1024 }
 0x2aa   : > { %v1424_v18 = vpop.permute.xlu0 %1423  ;;  %p2734_p11 = scmp.ne.s32.totalorder %s3558_s17, %s2733_s26 }
 0x2ab   : > { %v1422_v19 = vpop.permute.xlu1 %1421  ;;  %1446 = vst.msk [vmem:[#allocation5 + $0x8] sm:$0xf] %vm1443_vm1, %v1424_v18 }
 0x2ac   : > { %1445 = vst.msk [vmem:[#allocation5 + $0x4] sm:$0xf] %vm1443_vm1, %v1422_v19  ;;  %1943 = vrot.lane.b32.xlu0 %v2584_v13, %s2809_s23  ;;  %p2735_p12 = pnand %p2734_p11, %p2900_p5 }
 0x2ad   : > { %1945 = vrot.lane.b32.xlu1 %v2608_v17, %s2809_s23  ;;  %s2737_s23 = sshll.u32 %s2810_s14, 4  ;;  %s2738_s23 = int_to_ptr.vmem [resolvable:$false] %s2737_s23 }
 0x2ae   : > { %v1497_v20 = vpop.permute.xlu0 %1496  ;;  %p2736_p13 = pneg %p2735_p12  ;;  %s2739_s24 = scalar_lea.vmem %s2738_s23, 2048 }
 0x2af   : > { %v1426_v21 = vpop.permute.xlu1 %1425  ;;  %1519 = vst.msk [vmem:[#allocation5 + $0x8] sm:$0xf] %vm1516_vm3, %v1497_v20  ;;  %p2740_p0 = scmp.lt.s32.totalorder %s3558_s17, %s2738_s23  ;;  %p2741_p1 = scmp.lt.s32.totalorder %s2739_s24, %s2733_s26 }
 0x2b0   : > { %1447 = vst.msk [vmem:[#allocation5 + $0xc] sm:$0xf] %vm1443_vm1, %v1426_v21 }
 0x2b1   : > { %p2742_p2 = por %p2741_p1, %p2740_p0 }
 0x2b2   : > { %v1566_v22 = vpop.permute.xlu0 %1565 }
 0x2b3   : > { %v1495_v23 = vpop.permute.xlu1 %1494  ;;  %1590 = vst.msk [vmem:[#allocation5] sm:$0xf] %vm1589_vm13, %v1566_v22  ;;  %p2743_p3 = pnand %p2742_p2, %p2736_p13 }
 0x2b4   : > { %1518 = vst.msk [vmem:[#allocation5 + $0x4] sm:$0xf] %vm1516_vm3, %v1495_v23 }
 0x2b6   : > { %v1570_v24 = vpop.permute.xlu0 %1569 }
 0x2b7   : > { %v1499_v25 = vpop.permute.xlu1 %1498  ;;  %1592 = vst.msk [vmem:[#allocation5 + $0x8] sm:$0xf] %vm1589_vm13, %v1570_v24 }
 0x2b8   : > { %1520 = vst.msk [vmem:[#allocation5 + $0xc] sm:$0xf] %vm1516_vm3, %v1499_v25 }
 0x2ba   : > { %v1639_v26 = vpop.permute.xlu0 %1638 }
 0x2bb   : > { %v1568_v27 = vpop.permute.xlu1 %1567  ;;  %1663 = vst.msk [vmem:[#allocation5] sm:$0xf] %vm1662_vm15, %v1639_v26 }
 0x2bc   : > { %1591 = vst.msk [vmem:[#allocation5 + $0x4] sm:$0xf] %vm1589_vm13, %v1568_v27 }
 0x2be   : > { %v1643_v28 = vpop.permute.xlu0 %1642 }
 0x2bf   : > { %v1572_v29 = vpop.permute.xlu1 %1571  ;;  %1665 = vst.msk [vmem:[#allocation5 + $0x8] sm:$0xf] %vm1662_vm15, %v1643_v28 }
 0x2c0   : > { %1593 = vst.msk [vmem:[#allocation5 + $0xc] sm:$0xf] %vm1589_vm13, %v1572_v29 }
 0x2c2   : > { %v1712_v30 = vpop.permute.xlu0 %1711 }
 0x2c3   : > { %v1641_v31 = vpop.permute.xlu1 %1640  ;;  %1736 = vst.msk [vmem:[#allocation5] sm:$0xf] %vm1735_vm0, %v1712_v30 }
 0x2c4   : > { %1664 = vst.msk [vmem:[#allocation5 + $0x4] sm:$0xf] %vm1662_vm15, %v1641_v31 }
 0x2c6   : > { %v1716_v32 = vpop.permute.xlu0 %1715 }
 0x2c7   : > { %v1645_v33 = vpop.permute.xlu1 %1644  ;;  %1738 = vst.msk [vmem:[#allocation5 + $0x8] sm:$0xf] %vm1735_vm0, %v1716_v32 }
 0x2c8   : > { %1666 = vst.msk [vmem:[#allocation5 + $0xc] sm:$0xf] %vm1662_vm15, %v1645_v33 }
 0x2ca   : > { %v1786_v34 = vpop.permute.xlu0 %1785 }
 0x2cb   : > { %v1714_v35 = vpop.permute.xlu1 %1713  ;;  %1810 = vst.msk [vmem:[#allocation5] sm:$0xf] %vm1809_vm2, %v1786_v34 }
 0x2cc   : > { %1737 = vst.msk [vmem:[#allocation5 + $0x4] sm:$0xf] %vm1735_vm0, %v1714_v35 }
 0x2ce   : > { %v1790_v36 = vpop.permute.xlu0 %1789 }
 0x2cf   : > { %v1718_v37 = vpop.permute.xlu1 %1717  ;;  %1812 = vst.msk [vmem:[#allocation5 + $0x8] sm:$0xf] %vm1809_vm2, %v1790_v36 }
 0x2d0   : > { %1739 = vst.msk [vmem:[#allocation5 + $0xc] sm:$0xf] %vm1735_vm0, %v1718_v37 }
 0x2d2   : > { %v1859_v38 = vpop.permute.xlu0 %1858 }
 0x2d3   : > { %v1788_v39 = vpop.permute.xlu1 %1787  ;;  %1883 = vst.msk [vmem:[#allocation5] sm:$0xf] %vm1882_vm4, %v1859_v38 }
 0x2d4   : > { %1811 = vst.msk [vmem:[#allocation5 + $0x4] sm:$0xf] %vm1809_vm2, %v1788_v39 }
 0x2d6   : > { %v1863_v41 = vpop.permute.xlu0 %1862 }
 0x2d7   : > { %v1792_v44 = vpop.permute.xlu1 %1791  ;;  %1885 = vst.msk [vmem:[#allocation5 + $0x8] sm:$0xf] %vm1882_vm4, %v1863_v41 }
 0x2d8   : > { %1813 = vst.msk [vmem:[#allocation5 + $0xc] sm:$0xf] %vm1809_vm2, %v1792_v44 }
 0x2da   : > { %v1932_v46 = vpop.permute.xlu0 %1931 }
 0x2db   : > { %v1861_v47 = vpop.permute.xlu1 %1860  ;;  %1956 = vst.msk [vmem:[#allocation5] sm:$0xf] %vm1955_vm5, %v1932_v46 }
 0x2dc   : > { %1884 = vst.msk [vmem:[#allocation5 + $0x4] sm:$0xf] %vm1882_vm4, %v1861_v47 }
 0x2de   : > { %v1428_v48 = vpop.permute.xlu0 %1427 }
 0x2df   : > { %v1865_v49 = vpop.permute.xlu1 %1864  ;;  %1448 = vst.msk [vmem:[#allocation5 + $0x10] sm:$0xf] %vm1443_vm1, %v1428_v48 }
 0x2e0   : > { %1886 = vst.msk [vmem:[#allocation5 + $0xc] sm:$0xf] %vm1882_vm4, %v1865_v49 }
 0x2e2   : > { %v1936_v50 = vpop.permute.xlu0 %1935 }
 0x2e3   : > { %v1934_v51 = vpop.permute.xlu1 %1933  ;;  %1958 = vst.msk [vmem:[#allocation5 + $0x8] sm:$0xf] %vm1955_vm5, %v1936_v50 }
 0x2e4   : > { %1957 = vst.msk [vmem:[#allocation5 + $0x4] sm:$0xf] %vm1955_vm5, %v1934_v51 }
 0x2e6   : > { %v1432_v52 = vpop.permute.xlu0 %1431 }
 0x2e7   : > { %v1430_v53 = vpop.permute.xlu1 %1429  ;;  %1450 = vst.msk [vmem:[#allocation5 + $0x18] sm:$0xf] %vm1443_vm1, %v1432_v52 }
 0x2e8   : > { %1449 = vst.msk [vmem:[#allocation5 + $0x14] sm:$0xf] %vm1443_vm1, %v1430_v53 }
 0x2ea   : > { %v1501_v54 = vpop.permute.xlu0 %1500 }
 0x2eb   : > { %v1938_v55 = vpop.permute.xlu1 %1937  ;;  %v2724_v56 = vld [vmem:[#allocation5] sm:$0xff]   ;;  %1521 = vst.msk [vmem:[#allocation5 + $0x10] sm:$0xf] %vm1516_vm3, %v1501_v54 }
 0x2ec   : > { %1959 = vst.msk [vmem:[#allocation5 + $0xc] sm:$0xf] %vm1955_vm5, %v1938_v55  ;;  %2650 = vmatprep.mubr.msk.bf16.mxu1 %vm2028_vm6, %v2724_v56 }
 0x2ee   : > { %v1505_v57 = vpop.permute.xlu0 %1504 }
 0x2ef   : > { %v1434_v58 = vpop.permute.xlu1 %1433  ;;  %1523 = vst.msk [vmem:[#allocation5 + $0x18] sm:$0xf] %vm1516_vm3, %v1505_v57 }
 0x2f0   : > { %1451 = vst.msk [vmem:[#allocation5 + $0x1c] sm:$0xf] %vm1443_vm1, %v1434_v58 }
 0x2f2   : > { %v1574_v59 = vpop.permute.xlu0 %1573 }
 0x2f3   : > { %v1503_v60 = vpop.permute.xlu1 %1502  ;;  %v2726_v63 = vld [vmem:[#allocation5 + $0x8] sm:$0xff]   ;;  %1594 = vst.msk [vmem:[#allocation5 + $0x10] sm:$0xf] %vm1589_vm13, %v1574_v59 }
 0x2f4   : > { %1522 = vst.msk [vmem:[#allocation5 + $0x14] sm:$0xf] %vm1516_vm3, %v1503_v60  ;;  %2651 = vmatmul.mubr.msk.bf16.vlgmr.msra.gmra.mrb[0].mxu1 %vm2028_vm6, %v2726_v63 }
 0x2f6   : > { %v1578_v1 = vpop.permute.xlu0 %1577 }
 0x2f7   : > { %v1507_v3 = vpop.permute.xlu1 %1506  ;;  %1596 = vst.msk [vmem:[#allocation5 + $0x18] sm:$0xf] %vm1589_vm13, %v1578_v1 }
 0x2f8   : > { %1524 = vst.msk [vmem:[#allocation5 + $0x1c] sm:$0xf] %vm1516_vm3, %v1507_v3 }
 0x2fa   : > { %v1647_v0 = vpop.permute.xlu0 %1646 }
 0x2fb   : > { %v1576_v5 = vpop.permute.xlu1 %1575  ;;  %1667 = vst.msk [vmem:[#allocation5 + $0x10] sm:$0xf] %vm1662_vm15, %v1647_v0 }
 0x2fc   : > { %1595 = vst.msk [vmem:[#allocation5 + $0x14] sm:$0xf] %vm1589_vm13, %v1576_v5 }
 0x2fe   : > { %v1651_v43 = vpop.permute.xlu0 %1650 }
 0x2ff   : > { %v1580_v6 = vpop.permute.xlu1 %1579  ;;  %1669 = vst.msk [vmem:[#allocation5 + $0x18] sm:$0xf] %vm1662_vm15, %v1651_v43 }
 0x300   : > { %1597 = vst.msk [vmem:[#allocation5 + $0x1c] sm:$0xf] %vm1589_vm13, %v1580_v6 }
 0x302   : > { %v1720_v40 = vpop.permute.xlu0 %1719 }
 0x303   : > { %v1649_v7 = vpop.permute.xlu1 %1648  ;;  %1740 = vst.msk [vmem:[#allocation5 + $0x10] sm:$0xf] %vm1735_vm0, %v1720_v40 }
 0x304   : > { %1668 = vst.msk [vmem:[#allocation5 + $0x14] sm:$0xf] %vm1662_vm15, %v1649_v7 }
 0x306   : > { %v1724_v42 = vpop.permute.xlu0 %1723 }
 0x307   : > { %v1653_v62 = vpop.permute.xlu1 %1652  ;;  %1742 = vst.msk [vmem:[#allocation5 + $0x18] sm:$0xf] %vm1735_vm0, %v1724_v42 }
 0x308   : > { %1670 = vst.msk [vmem:[#allocation5 + $0x1c] sm:$0xf] %vm1662_vm15, %v1653_v62 }
 0x30a   : > { %v1794_v4 = vpop.permute.xlu0 %1793 }
 0x30b   : > { %v1722_v8 = vpop.permute.xlu1 %1721  ;;  %1814 = vst.msk [vmem:[#allocation5 + $0x10] sm:$0xf] %vm1809_vm2, %v1794_v4 }
 0x30c   : > { %1741 = vst.msk [vmem:[#allocation5 + $0x14] sm:$0xf] %vm1735_vm0, %v1722_v8 }
 0x30e   : > { %v1798_v61 = vpop.permute.xlu0 %1797 }
 0x30f   : > { %v1726_v2 = vpop.permute.xlu1 %1725  ;;  %1816 = vst.msk [vmem:[#allocation5 + $0x18] sm:$0xf] %vm1809_vm2, %v1798_v61 }
 0x310   : > { %1743 = vst.msk [vmem:[#allocation5 + $0x1c] sm:$0xf] %vm1735_vm0, %v1726_v2 }
 0x311   : > { %1817 = vst.msk [vmem:[#allocation5 + $0x1c] sm:$0xf] %vm1809_vm2, %v3416_v14 }
 0x312   : > { %1890 = vst.msk [vmem:[#allocation5 + $0x1c] sm:$0xf] %vm1882_vm4, %v3423_v15  ;;  %v1867_v9 = vpop.permute.xlu0 %1866 }
 0x313   : > { %v1796_v10 = vpop.permute.xlu1 %1795  ;;  %1887 = vst.msk [vmem:[#allocation5 + $0x10] sm:$0xf] %vm1882_vm4, %v1867_v9 }
 0x314   : > { %1815 = vst.msk [vmem:[#allocation5 + $0x14] sm:$0xf] %vm1809_vm2, %v1796_v10 }
 0x316   : > { %v1871_v11 = vpop.permute.xlu0 %1870 }
 0x317   : > { %v1869_v12 = vpop.permute.xlu1 %1868  ;;  %1889 = vst.msk [vmem:[#allocation5 + $0x18] sm:$0xf] %vm1882_vm4, %v1871_v11 }
 0x318   : > { %1888 = vst.msk [vmem:[#allocation5 + $0x14] sm:$0xf] %vm1882_vm4, %v1869_v12 }
 0x31a   : > { %v1940_v13 = vpop.permute.xlu0 %1939 }
 0x31b   : > { %v1942_v16 = vpop.permute.xlu1 %1941  ;;  %1960 = vst.msk [vmem:[#allocation5 + $0x10] sm:$0xf] %vm1955_vm5, %v1940_v13 }
 0x31c   : > { %1961 = vst.msk [vmem:[#allocation5 + $0x14] sm:$0xf] %vm1955_vm5, %v1942_v16 }
 0x31e   : > { %v1944_v14 = vpop.permute.xlu0 %1943 }
 0x31f   : > { %v1946_v15 = vpop.permute.xlu1 %1945  ;;  %1962 = vst.msk [vmem:[#allocation5 + $0x18] sm:$0xf] %vm1955_vm5, %v1944_v14 }
 0x320   : > { %1963 = vst.msk [vmem:[#allocation5 + $0x1c] sm:$0xf] %vm1955_vm5, %v1946_v15 }
 0x323   : > { %v2727_v17 = vld [vmem:[#allocation5 + $0x10] sm:$0xff]  }
 0x324   : > { %2654 = vmatprep.mubr.msk.bf16.mxu1 %vm2028_vm6, %v2727_v17 }
 0x327   : > { %v2728_v18 = vld [vmem:[#allocation5 + $0x18] sm:$0xff]  }
 0x328   : > { %2655 = vmatmul.mubr.msk.bf16.gmra.mrb[4].mxu1 %vm2028_vm6, %v2728_v18 }
 0x3c7   : > { %v3497_v19 = vpop.f32.mrb[0].mxu1 }
 0x3c8   : > { %v3499_v20 = vpop.f32.mrb[1].mxu1  ;;  %v2133_v24 = vmul.f32 %v3497_v19, %v3497_v19  ;;  %v2113_v29 = vsel %vm1197_vm14, %v3497_v19, 0.0 }
 0x3c9   : > { %v2131_v21 = vmul.f32 %v3499_v20, %v3499_v20  ;;  %v3503_v22 = vpop.f32.mrb[2].mxu1  ;;  %v2110_v25 = vsel %vm1197_vm14, %v3499_v20, 0.0 }
 0x3ca   : > { %v3505_v23 = vpop.f32.mrb[3].mxu1  ;;  %v2134_v31 = vmul.f32 %v3503_v22, %v3503_v22  ;;  %v2142_v35 = vsel %vm1197_vm14, %v2133_v24, 0.0  ;;  %v2115_v36 = vsel %vm1197_vm14, %v3503_v22, 0.0 }
 0x3cb   : > { %v2111_v26 = vsel %vm1197_vm14, %v3505_v23, 0.0  ;;  %v2132_v27 = vmul.f32 %v3505_v23, %v3505_v23  ;;  %v2139_v30 = vsel %vm1197_vm14, %v2131_v21, 0.0  ;;  %v2164_v21 = vld [vmem:[%s3617_s6] sm:$0x1] }
 0x3cc   : > { %v2112_v28 = vadd.f32 %v2111_v26, %v2110_v25  ;;  %v2144_v39 = vsel %vm1197_vm14, %v2134_v31, 0.0  ;;  %v2168_v26 = vld [vmem:[%s3618_s7] sm:$0x1] }
 0x3cd   : > { %v2140_v32 = vsel %vm1197_vm14, %v2132_v27, 0.0 }
 0x3ce   : > { %v2114_v33 = vadd.f32 %v2113_v29, %v2112_v28  ;;  %v2141_v34 = vadd.f32 %v2140_v32, %v2139_v30 }
 0x3d0   : > { %v2143_v37 = vadd.f32 %v2142_v35, %v2141_v34  ;;  %v2116_v38 = vadd.f32 %v2115_v36, %v2114_v33 }
 0x3d2   : > { %v2145_v41 = vadd.f32 %v2144_v39, %v2143_v37  ;;  %v2474_v39 = vld [vmem:[%s3619_s8] ss:$0 sm:$0xff] }
 0x3fb   : > { %v2656_v44 = vpop.f32.mrb[4].mxu1 }
 0x3fc   : > { %v2095_v46 = vpop.f32.mrb[5].mxu1  ;;  %v2137_v52 = vmul.f32 %v2656_v44, %v2656_v44  ;;  %v2121_v58 = vsel %vm1197_vm14, %v2656_v44, 0.0 }
 0x3fd   : > { %v2117_v47 = vsel %vm1197_vm14, %v2095_v46, 0.0  ;;  %v2135_v48 = vmul.f32 %v2095_v46, %v2095_v46  ;;  %v2657_v49 = vpop.f32.mrb[6].mxu1 }
 0x3fe   : > { %v2118_v50 = vadd.f32 %v2117_v47, %v2116_v38  ;;  %v2098_v51 = vpop.f32.mrb[7].mxu1  ;;  %v2138_v59 = vmul.f32 %v2657_v49, %v2657_v49  ;;  %v2150_v3 = vsel %vm1197_vm14, %v2137_v52, 0.0  ;;  %v2123_v0 = vsel %vm1197_vm14, %v2657_v49, 0.0 }
 0x3ff   : > { %v2146_v53 = vsel %vm1197_vm14, %v2135_v48, 0.0  ;;  %v2119_v54 = vsel %vm1197_vm14, %v2098_v51, 0.0  ;;  %v2136_v55 = vmul.f32 %v2098_v51, %v2098_v51 }
 0x400   : > { %v2147_v56 = vadd.f32 %v2146_v53, %v2145_v41  ;;  %v2120_v57 = vadd.f32 %v2119_v54, %v2118_v50  ;;  %v2152_v6 = vsel %vm1197_vm14, %v2138_v59, 0.0 }
 0x401   : > { %v2148_v60 = vsel %vm1197_vm14, %v2136_v55, 0.0 }
 0x402   : > { %v2122_v63 = vadd.f32 %v2121_v58, %v2120_v57  ;;  %v2149_v1 = vadd.f32 %v2148_v60, %v2147_v56 }
 0x404   : > { %v2124_v5 = vadd.f32 %v2123_v0, %v2122_v63  ;;  %v2151_v43 = vadd.f32 %v2150_v3, %v2149_v1 }
 0x406   : > { %v2125_v40 = vrot.slane %v2124_v5, 4  ;;  %v2153_v7 = vadd.f32 %v2152_v6, %v2151_v43 }
 0x408   : > { %v2126_v42 = vadd.f32 %v2125_v40, %v2124_v5  ;;  %v2154_v62 = vrot.slane %v2153_v7, 4 }
 0x40a   : > { %v2127_v4 = vrot.slane %v2126_v42, 2  ;;  %v2155_v8 = vadd.f32 %v2154_v62, %v2153_v7 }
 0x40c   : > { %v2128_v61 = vadd.f32 %v2127_v4, %v2126_v42  ;;  %v2156_v2 = vrot.slane %v2155_v8, 2 }
 0x40e   : > { %v2129_v9 = vrot.slane %v2128_v61, 1  ;;  %v2157_v10 = vadd.f32 %v2156_v2, %v2155_v8 }
 0x410   : > { %v2130_v11 = vadd.f32 %v2129_v9, %v2128_v61  ;;  %v2158_v12 = vrot.slane %v2157_v10, 1 }
 0x412   : > { %v2159_v13 = vadd.f32 %v2158_v12, %v2157_v10  ;;  %v2160_v16 = vmul.f32 0.015625, %v2130_v11 }
 0x414   : > { %v2161_v14 = vmul.f32 0.015625, %v2159_v13  ;;  %v2162_v15 = vmul.f32 %v2160_v16, %v2160_v16 }
 0x416   : > { %v2163_v17 = vsub.f32 %v2161_v14, %v2162_v15 }
 0x418   : > { %v2165_v18 = vadd.f32 1e-05, %v2163_v17 }
 0x41a   : > { %2731 = vrsqrt.f32 %v2165_v18 }
 0x424   : > { %v2732_v24 = vpop.eup %2731 }
 0x425   : > { %v2167_v25 = vmul.f32 %v2732_v24, %v2164_v21 }
 0x427   : > { %v2169_v27 = vmul.f32 %v2167_v25, %v2160_v16  ;;  %v2175_v28 = vrot.slane %v2167_v25, %v3302_v45 }
 0x429   : > { %v2170_v29 = vsub.f32 %v2168_v26, %v2169_v27  ;;  %v2177_v30 = vmul.f32 %v2175_v28, %v3499_v20  ;;  %v2178_v31 = vmul.f32 %v2175_v28, %v3505_v23  ;;  %v2179_v32 = vmul.f32 %v3497_v19, %v2175_v28 }
 0x42a   : > { %v2180_v33 = vmul.f32 %v3503_v22, %v2175_v28  ;;  %v2181_v34 = vmul.f32 %v2175_v28, %v2095_v46  ;;  %v2182_v35 = vmul.f32 %v2175_v28, %v2098_v51  ;;  %v2183_v36 = vmul.f32 %v2656_v44, %v2175_v28 }
 0x42b   : > { %v2184_v37 = vmul.f32 %v2657_v49, %v2175_v28  ;;  %v2189_v38 = vrot.slane %v2170_v29, %v3302_v45 }
 0x42d   : > { %v2191_v20 = vadd.f32 %v2189_v38, %v2177_v30  ;;  %v2192_v41 = vadd.f32 %v2189_v38, %v2178_v31  ;;  %v2193_v23 = vadd.f32 %v2189_v38, %v2179_v32  ;;  %v2194_v47 = vadd.f32 %v2189_v38, %v2180_v33 }
 0x42e   : > { %v2195_v19 = vadd.f32 %v2189_v38, %v2181_v34  ;;  %v2196_v48 = vadd.f32 %v2189_v38, %v2182_v35  ;;  %v2197_v50 = vadd.f32 %v2189_v38, %v2183_v36  ;;  %v2198_v52 = vadd.f32 %v2189_v38, %v2184_v37 }
 0x42f   : > { %v2214_v22 = vmul.f32 %v2474_v39, %v2191_v20  ;;  %v2215_v46 = vmul.f32 %v2474_v39, %v2192_v41  ;;  %v2216_v51 = vmul.f32 %v2474_v39, %v2193_v23  ;;  %v2217_v44 = vmul.f32 %v2474_v39, %v2194_v47 }
 0x430   : > { %vm2204_vm1 = vcmp.gt.f32.partialorder %v2196_v48, 0.0  ;;  %v2218_v49 = vmul.f32 %v2474_v39, %v2195_v19  ;;  %v2219_v45 = vmul.f32 %v2474_v39, %v2196_v48  ;;  %v2220_v53 = vmul.f32 %v2474_v39, %v2197_v50 }
 0x431   : > { %v2221_v54 = vmul.f32 %v2474_v39, %v2198_v52  ;;  %vm2199_vm3 = vcmp.gt.f32.partialorder %v2191_v20, 0.0  ;;  %vm2200_vm7 = vcmp.gt.f32.partialorder %v2192_v41, 0.0  ;;  %vm2201_vm8 = vcmp.gt.f32.partialorder %v2193_v23, 0.0 }
 0x432   : > { %v2227_v55 = vsel %vm2204_vm1, %v2196_v48, %v2219_v45  ;;  %vm2202_vm9 = vcmp.gt.f32.partialorder %v2194_v47, 0.0  ;;  %vm2203_vm10 = vcmp.gt.f32.partialorder %v2195_v19, 0.0  ;;  %vm2205_vm11 = vcmp.gt.f32.partialorder %v2197_v50, 0.0 }
 0x433   : > { %2235 = vst.msk [vmem:[%s325_s22 + $0x28] sm:$0xff] %vm1197_vm14, %v2227_v55  ;;  %vm2206_vm12 = vcmp.gt.f32.partialorder %v2198_v52, 0.0  ;;  %v2222_v56 = vsel %vm2199_vm3, %v2191_v20, %v2214_v22  ;;  %v2223_v57 = vsel %vm2200_vm7, %v2192_v41, %v2215_v46  ;;  %v2224_v58 = vsel %vm2201_vm8, %v2193_v23, %v2216_v51 }
 0x434   : > { %v2225_v59 = vsel %vm2202_vm9, %v2194_v47, %v2217_v44  ;;  %v2226_v60 = vsel %vm2203_vm10, %v2195_v19, %v2218_v49  ;;  %v2228_v63 = vsel %vm2205_vm11, %v2197_v50, %v2220_v53  ;;  %v2229_v1 = vsel %vm2206_vm12, %v2198_v52, %v2221_v54  ;;  %2230 = vst.msk [vmem:[%s325_s22] sm:$0xff] %vm1197_vm14, %v2222_v56 }
 0x435   : > { %2231 = vst.msk [vmem:[%s325_s22 + $0x8] sm:$0xff] %vm1197_vm14, %v2223_v57  ;;  %2232 = vst.msk [vmem:[%s325_s22 + $0x10] sm:$0xff] %vm1197_vm14, %v2224_v58 }
 0x436   : > { %2233 = vst.msk [vmem:[%s325_s22 + $0x18] sm:$0xff] %vm1197_vm14, %v2225_v59  ;;  %2234 = vst.msk [vmem:[%s325_s22 + $0x20] sm:$0xff] %vm1197_vm14, %v2226_v60 }
 0x437   : > { %2236 = vst.msk [vmem:[%s325_s22 + $0x30] sm:$0xff] %vm1197_vm14, %v2228_v63  ;;  %2237 = vst.msk [vmem:[%s325_s22 + $0x38] sm:$0xff] %vm1197_vm14, %v2229_v1 }
 0x438   : > { %2746 = shalt.err (!%p2743_p3)
}
 0x439   : > { %s2747_s28 = scalar_lea.hbm %s3555_s25, 1024  ;;  %s2751_s29 = scalar_lea.hbm %s3620_s9, 2048 }
 0x43a   : > { %p2748_p4 = scmp.ne.s32.totalorder %s3555_s25, %s2747_s28  ;;  %p2752_p9 = scmp.lt.u32.totalorder %s3555_s25, %s3620_s9 }
 0x43b   : > { %p2753_p10 = scmp.lt.u32.totalorder %s2751_s29, %s2747_s28  ;;  %p2755_p12 = scmp.lt.u32.totalorder %s2747_s28, %s3555_s25 }
 0x43c   : > { %p2749_p7 = pnand %p2748_p4, %p2900_p5 }
 0x43d   : > { %p2754_p11 = por %p2753_p10, %p2752_p9 }
 0x43e   : > { %p2750_p8 = pneg %p2749_p7 }
 0x43f   : > { %p2756_p13 = por %p2755_p12, %p2754_p11 }
 0x441   : > { %p2757_p0 = pnand %p2756_p13, %p2750_p8 }
 0x443   : > { %2760 = shalt.err (!%p2757_p0)
}
 0x444   : > { %s2811_s26 = smov 128  }
 0x445   : > { %2660 = dma.vmem_to_hbm [thread:$0]  (%p2900_p5), %s3558_s17, 1024, %s3555_s25, %s3569_s13, %s2811_s26, %s2811_s26, %s2799_s27  }
 0x446 PF: > { %p2666_p1 = scmp.ge.s32.totalorder %s2795_s12, 2  ;;  %s2267_s23 = sand.u32 1, %s2783_s30  }
 0x447   : > { %s2268_s24 = scalar_lea.sflag [#allocation7], %s2267_s23 }
 0x448   : > { %p2663_p2 = pnand %p2666_p1, %p2904_p6 }
 0x44a   : > { %2778 = dma.done.wait (!%p2663_p2), %s2268_s24, 1024  }
 0x44b   : > { %2780 = vsyncadd (!%p2663_p2), %s2268_s24, 4294966272  ;;  %p19_p3 = scmp.ge.s32.totalorder %s2887_s15, 4   ;;  %s3623_s30 = smov %s2787_s10 }
 0x44c   : > { %s3624_s10 = smov %s2791_s11  ;;  %s3625_s11 = smov %s2898_s18 }
 0x44d   : > { %s3626_s12 = smov %s2887_s15  ;;  %21 = sbr.rel (!%p19_p3) target bundleno = 3 (0x3), region = 97 }
 0x454   :  { %2273 = vsyncpa [#allocation7], 1 }
 0x455   :  { %2275 = vsyncpa [#allocation7 + $0x1], 1 }

</bundles_post_ra>
